<compile_context>
chip_gen: v6e
topology: v6e:2x2x1
jax: 0.10.0
libtpu: 0.0.40
codegen_flags: <defaults>
</compile_context>

<pallas_src>
import functools

import jax
import jax.numpy as jnp
import numpy as np
from jax.experimental import pallas as pl
from jax.experimental.pallas import tpu as pltpu


# ----------------------------- Pallas kernel ------------------------------ #

def critic_kernel(x_ref, w1_ref, b1_ref, whh1w2_ref, b2_ref, whh2wout_ref,
                  bout_ref, out_ref, xg1_scr, *, T, Bp, H, Dpad):
    """Fused Critic forward.

    x_ref:        (T*Bp, Din)      time-major, batch-padded input
    w1_ref:       (Din, 4H)        folded enc_in -> enc LSTM input-side weights (gate-scaled)
    b1_ref:       (1, 4H)          folded + gate-scaled
    whh1w2_ref:   (H, 8H)          [enc_whh | enc_out->dec_in->dec_wih], both gate-scaled
    b2_ref:       (1, 4H)          folded + gate-scaled decoder input-side bias
    whh2wout_ref: (H, 4H + Dpad)   [dec_whh (gate-scaled) | dec_out_w (lane-padded)]
    bout_ref:     (1, Dpad)
    out_ref:      (T*Bp, Dpad)     time-major, batch-padded, lane-dense output
    xg1_scr:      (T*Bp, 4H)       VMEM scratch for whole-sequence encoder input gates
    """
    G = 4 * H

    # Whole-sequence encoder input-side gate pre-activations: one big MXU pass,
    # parked in VMEM scratch (per-step reloads are aligned and off the critical path).
    xg1_scr[...] = (
        jnp.dot(x_ref[...], w1_ref[...], preferred_element_type=jnp.float32)
        + b1_ref[...])

    # Fused recurrent weight blocks, read once (fits comfortably in vregs).
    whh1w2 = whh1w2_ref[...]
    whh2wout = whh2wout_ref[...]

    # Loop-invariant bias broadcasts hoisted out of the unrolled loop.
    b2b = jnp.broadcast_to(b2_ref[...], (Bp, G))
    boutb = jnp.broadcast_to(bout_ref[...], (Bp, Dpad))

    # Recurrent carries. rec* already contain h @ whh (gate-scaled) from the fused dot.
    rec1 = jnp.zeros((Bp, G), jnp.float32)
    rec2 = jnp.zeros((Bp, G), jnp.float32)
    c1 = jnp.zeros((Bp, H), jnp.float32)
    c2 = jnp.zeros((Bp, H), jnp.float32)

    def lstm_cell(z, c):
        # z holds [i/2, f/2, g, o/2] pre-activations (host pre-scaled weights), so a
        # single full-width tanh covers all four gates: sigmoid(x) = 0.5*(tanh(x/2)+1).
        th = jnp.tanh(z)                              # EUP push #1 (Bp, 4H)
        i = 0.5 * (th[:, 0 * H:1 * H] + 1.0)
        f = 0.5 * (th[:, 1 * H:2 * H] + 1.0)
        g = th[:, 2 * H:3 * H]
        o = 0.5 * (th[:, 3 * H:4 * H] + 1.0)
        c_new = f * c + i * g
        h_new = o * jnp.tanh(c_new)                   # EUP push #2 (Bp, H)
        return h_new, c_new

    # Single fused, fully unrolled time loop: decoder step t only needs encoder h_t.
    for t in range(T):  # T is small & static
        r0 = t * Bp

        # ----- encoder LSTM step -----
        g1 = xg1_scr[r0:r0 + Bp, :] + rec1
        h1, c1 = lstm_cell(g1, c1)

        # ----- fused dot #1: next-step encoder recurrence | decoder input gates -----
        r1 = jnp.dot(h1, whh1w2, preferred_element_type=jnp.float32)
        rec1 = r1[:, :G]

        # ----- decoder LSTM step -----
        g2 = r1[:, G:] + b2b + rec2
        h2, c2 = lstm_cell(g2, c2)

        # ----- fused dot #2: next-step decoder recurrence | output projection -----
        r2 = jnp.dot(h2, whh2wout, preferred_element_type=jnp.float32)
        rec2 = r2[:, :G]

        # Lane-dense aligned (8, 128) store.
        out_ref[r0:r0 + Bp, :] = (r2[:, G:] + boutb).astype(out_ref.dtype)


# ------------------------------ host wrapper ------------------------------- #

@jax.jit
def critic_forward(x, p):
    B, T, Din = x.shape
    H = p["enc_whh"].shape[0]
    Bp = ((B + 7) // 8) * 8               # pad batch to f32 sublane height
    Dpad = ((Din + 127) // 128) * 128     # lane-dense output width

    # Fold the activation-free Linear chains (exact: no nonlinearity in between).
    w1 = p["enc_in_w"] @ p["enc_wih"]                                   # (Din, 4H)
    b1 = p["enc_in_b"] @ p["enc_wih"] + p["enc_b"]                      # (1, 4H)
    w2 = p["enc_out_w"] @ p["dec_in_w"] @ p["dec_wih"]                  # (H, 4H)
    b2 = (p["enc_out_b"] @ p["dec_in_w"] + p["dec_in_b"]) @ p["dec_wih"] + p["dec_b"]

    # Pre-scale the i/f/o gate columns (PyTorch order [i, f, g, o]) by 0.5 so the kernel
    # computes all gates with one tanh: sigmoid(x) = 0.5*(tanh(x/2)+1). Exact in real math.
    gate_scale = jnp.concatenate(
        [jnp.full((H,), 0.5, jnp.float32), jnp.full((H,), 0.5, jnp.float32),
         jnp.ones((H,), jnp.float32), jnp.full((H,), 0.5, jnp.float32)], axis=0)
    w1s, b1s = w1 * gate_scale, b1 * gate_scale
    whh1s = p["enc_whh"] * gate_scale
    w2s, b2s = w2 * gate_scale, b2 * gate_scale
    whh2s = p["dec_whh"] * gate_scale

    # Same-LHS matmul fusion: one 256-wide RHS per LSTM state.
    whh1w2 = jnp.concatenate([whh1s, w2s], axis=1)                      # (H, 8H)
    wout_pad = jnp.zeros((H, Dpad), jnp.float32).at[:, :Din].set(p["dec_out_w"])
    whh2wout = jnp.concatenate([whh2s, wout_pad], axis=1)               # (H, 4H+Dpad)
    bout = jnp.zeros((1, Dpad), jnp.float32).at[:, :Din].set(p["dec_out_b"])

    # Time-major, batch-padded, flattened input: row index = t * Bp + b.
    x_tm = jnp.transpose(x, (1, 0, 2))                        # (T, B, Din)
    x_tm = jnp.pad(x_tm, ((0, 0), (0, Bp - B), (0, 0)))       # (T, Bp, Din)
    x2d = x_tm.reshape(T * Bp, Din)

    kernel = functools.partial(critic_kernel, T=T, Bp=Bp, H=H, Dpad=Dpad)
    vmem = pl.BlockSpec(memory_space=pltpu.MemorySpace.VMEM)

    out2d = pl.pallas_call(
        kernel,
        out_shape=jax.ShapeDtypeStruct((T * Bp, Dpad), jnp.float32),
        in_specs=[vmem] * 7,
        out_specs=vmem,
        scratch_shapes=[pltpu.VMEM((T * Bp, 4 * H), jnp.float32)],
    )(x2d, w1s, b1s, whh1w2, b2s, whh2wout, bout)

    # Undo padding / layout on the host (negligible cost).
    return out2d.reshape(T, Bp, Dpad)[:, :B, :Din].transpose(1, 0, 2)


# --------------------------- pure-JAX reference ---------------------------- #

def critic_ref(x, p):
    """Unfused reference that mirrors the PyTorch Critic exactly."""
    def lstm(emb, wih, whh, b, H):
        B, T, _ = emb.shape
        h = jnp.zeros((B, H)); c = jnp.zeros((B, H))
        outs = []
        for t in range(T):
            gates = emb[:, t, :] @ wih + b + h @ whh
            i = jax.nn.sigmoid(gates[:, 0 * H:1 * H])
            f = jax.nn.sigmoid(gates[:, 1 * H:2 * H])
            g = jnp.tanh(gates[:, 2 * H:3 * H])
            o = jax.nn.sigmoid(gates[:, 3 * H:4 * H])
            c = f * c + i * g
            h = o * jnp.tanh(c)
            outs.append(h)
        return jnp.stack(outs, 1)

    H = p["enc_whh"].shape[0]
    emb = x @ p["enc_in_w"] + p["enc_in_b"]
    hs = lstm(emb, p["enc_wih"], p["enc_whh"], p["enc_b"], H)
    enc = hs @ p["enc_out_w"] + p["enc_out_b"]
    emb2 = enc @ p["dec_in_w"] + p["dec_in_b"]
    hs2 = lstm(emb2, p["dec_wih"], p["dec_whh"], p["dec_b"], H)
    return hs2 @ p["dec_out_w"] + p["dec_out_b"]


# ------------------------------- param init -------------------------------- #

def init_params(key, input_dim, embed_dim, hid_dim, output_dim):
    """Synthetic weights mirroring the PyTorch module's shapes.

    Linear layers follow layer_init(..., 0.001): small-std weights, zero bias.
    LSTM weights follow PyTorch default U(-1/sqrt(H), 1/sqrt(H)); b_ih + b_hh are folded
    into one bias. Weights stored as (in_features, out_features) so y = x @ W + b.
    """
    ks = jax.random.split(key, 12)
    H = hid_dim
    s = 1.0 / np.sqrt(H)

    def lin(k, din, dout, std=0.001):
        return (std * jax.random.normal(k, (din, dout), jnp.float32),
                jnp.zeros((1, dout), jnp.float32))

    def lstm(k1, k2, k3, din):
        wih = jax.random.uniform(k1, (din, 4 * H), jnp.float32, -s, s)
        whh = jax.random.uniform(k2, (H, 4 * H), jnp.float32, -s, s)
        b = jax.random.uniform(k3, (1, 4 * H), jnp.float32, -2 * s, 2 * s)  # b_ih + b_hh
        return wih, whh, b

    p = {}
    p["enc_in_w"], p["enc_in_b"] = lin(ks[0], input_dim, embed_dim)
    p["enc_wih"], p["enc_whh"], p["enc_b"] = lstm(ks[1], ks[2], ks[3], embed_dim)
    p["enc_out_w"], p["enc_out_b"] = lin(ks[4], hid_dim, output_dim)
    p["dec_in_w"], p["dec_in_b"] = lin(ks[5], output_dim, embed_dim)
    p["dec_wih"], p["dec_whh"], p["dec_b"] = lstm(ks[6], ks[7], ks[8], embed_dim)
    p["dec_out_w"], p["dec_out_b"] = lin(ks[9], hid_dim, input_dim)
    return p


# ---------------------------------- main ------------------------------------ #

if __name__ == "__main__":
    B, T = 2, 8                    # batch, sequence length
    input_dim, embed_dim, hid_dim, output_dim = 6, 16, 32, 4

    key = jax.random.PRNGKey(0)
    kx, kp = jax.random.split(key)
    x = jax.random.normal(kx, (B, T, input_dim), jnp.float32)
    params = init_params(kp, input_dim, embed_dim, hid_dim, output_dim)

    out = critic_forward(x, params)
    out = jax.block_until_ready(out)

    ref = critic_ref(x, params)
    np.testing.assert_allclose(np.asarray(out), np.asarray(ref), rtol=1e-4, atol=2e-5)
    assert out.shape == (B, T, input_dim)

    print("KERNEL_OK")
</pallas_src>

<mosaic_0001>
module attributes {stable_mosaic.version = 11 : i64} {
  func.func @critic_kernel(%arg0: memref<64x6xf32, #tpu.memory_space<vmem>>, %arg1: memref<6x128xf32, #tpu.memory_space<vmem>>, %arg2: memref<1x128xf32, #tpu.memory_space<vmem>>, %arg3: memref<32x256xf32, #tpu.memory_space<vmem>>, %arg4: memref<1x128xf32, #tpu.memory_space<vmem>>, %arg5: memref<32x256xf32, #tpu.memory_space<vmem>>, %arg6: memref<1x128xf32, #tpu.memory_space<vmem>>, %arg7: memref<64x128xf32, #tpu.memory_space<vmem>>, %arg8: memref<64x128xf32, #tpu.memory_space<vmem>>) attributes {dimension_semantics = [], scalar_prefetch = 0 : i64, scratch_operands = 1 : i64, tpu.core_type = #tpu.core_type<tc>} {
    %c0 = arith.constant 0 : index
    %c0_0 = arith.constant 0 : index
    %0 = vector.load %arg0[%c0, %c0_0] : memref<64x6xf32, #tpu.memory_space<vmem>>, vector<64x6xf32>
    %c0_1 = arith.constant 0 : index
    %c0_2 = arith.constant 0 : index
    %1 = vector.load %arg1[%c0_1, %c0_2] : memref<6x128xf32, #tpu.memory_space<vmem>>, vector<6x128xf32>
    %cst = arith.constant dense<0.000000e+00> : vector<64x128xf32>
    %2 = tpu.matmul %0, %1, %cst {dimension_numbers = #tpu.dot_dimension_numbers<[1], [0], [0], [1], [0, 0, 1, 1], [], []>} : vector<64x6xf32>, vector<6x128xf32>, vector<64x128xf32> -> vector<64x128xf32>
    %c0_3 = arith.constant 0 : index
    %c0_4 = arith.constant 0 : index
    %3 = vector.load %arg2[%c0_3, %c0_4] : memref<1x128xf32, #tpu.memory_space<vmem>>, vector<1x128xf32>
    %4 = vector.broadcast %3 : vector<1x128xf32> to vector<64x128xf32>
    %5 = arith.addf %2, %4 : vector<64x128xf32>
    %c0_5 = arith.constant 0 : index
    %c0_6 = arith.constant 0 : index
    %6 = vector.load %arg8[%c0_5, %c0_6] : memref<64x128xf32, #tpu.memory_space<vmem>>, vector<64x128xf32>
    tpu.vector_store %arg8[%c0_5, %c0_6], %5 {strides = array<i32>} : memref<64x128xf32, #tpu.memory_space<vmem>>, vector<64x128xf32>,
    %c0_7 = arith.constant 0 : index
    %c0_8 = arith.constant 0 : index
    %7 = vector.load %arg3[%c0_7, %c0_8] : memref<32x256xf32, #tpu.memory_space<vmem>>, vector<32x256xf32>
    %c0_9 = arith.constant 0 : index
    %c0_10 = arith.constant 0 : index
    %8 = vector.load %arg5[%c0_9, %c0_10] : memref<32x256xf32, #tpu.memory_space<vmem>>, vector<32x256xf32>
    %c0_11 = arith.constant 0 : index
    %c0_12 = arith.constant 0 : index
    %9 = vector.load %arg4[%c0_11, %c0_12] : memref<1x128xf32, #tpu.memory_space<vmem>>, vector<1x128xf32>
    %10 = vector.shape_cast %9 : vector<1x128xf32> to vector<1x128xf32>
    %11 = vector.broadcast %10 : vector<1x128xf32> to vector<8x128xf32>
    %c0_13 = arith.constant 0 : index
    %c0_14 = arith.constant 0 : index
    %12 = vector.load %arg6[%c0_13, %c0_14] : memref<1x128xf32, #tpu.memory_space<vmem>>, vector<1x128xf32>
    %13 = vector.shape_cast %12 : vector<1x128xf32> to vector<1x128xf32>
    %14 = vector.broadcast %13 : vector<1x128xf32> to vector<8x128xf32>
    %cst_15 = arith.constant 0.000000e+00 : f32
    %15 = vector.broadcast %cst_15 : f32 to vector<8x128xf32>
    %cst_16 = arith.constant 0.000000e+00 : f32
    %16 = vector.broadcast %cst_16 : f32 to vector<8x128xf32>
    %cst_17 = arith.constant 0.000000e+00 : f32
    %17 = vector.broadcast %cst_17 : f32 to vector<8x32xf32>
    %cst_18 = arith.constant 0.000000e+00 : f32
    %18 = vector.broadcast %cst_18 : f32 to vector<8x32xf32>
    %c0_19 = arith.constant 0 : index
    %c0_20 = arith.constant 0 : index
    %19 = vector.load %arg8[%c0_19, %c0_20] : memref<64x128xf32, #tpu.memory_space<vmem>>, vector<8x128xf32>
    %20 = arith.addf %19, %15 : vector<8x128xf32>
    %21 = math.tanh %20 : vector<8x128xf32>
    %22 = vector.extract_strided_slice %21 {offsets = [0, 0], sizes = [8, 32], strides = [1, 1]} : vector<8x128xf32> to vector<8x32xf32>
    %cst_21 = arith.constant 1.000000e+00 : f32
    %23 = vector.broadcast %cst_21 : f32 to vector<8x32xf32>
    %24 = arith.addf %22, %23 : vector<8x32xf32>
    %cst_22 = arith.constant 5.000000e-01 : f32
    %25 = vector.broadcast %cst_22 : f32 to vector<8x32xf32>
    %26 = arith.mulf %25, %24 : vector<8x32xf32>
    %27 = vector.extract_strided_slice %21 {offsets = [0, 32], sizes = [8, 32], strides = [1, 1]} : vector<8x128xf32> to vector<8x32xf32>
    %cst_23 = arith.constant 1.000000e+00 : f32
    %28 = vector.broadcast %cst_23 : f32 to vector<8x32xf32>
    %29 = arith.addf %27, %28 : vector<8x32xf32>
    %cst_24 = arith.constant 5.000000e-01 : f32
    %30 = vector.broadcast %cst_24 : f32 to vector<8x32xf32>
    %31 = arith.mulf %30, %29 : vector<8x32xf32>
    %32 = vector.extract_strided_slice %21 {offsets = [0, 64], sizes = [8, 32], strides = [1, 1]} : vector<8x128xf32> to vector<8x32xf32>
    %33 = vector.extract_strided_slice %21 {offsets = [0, 96], sizes = [8, 32], strides = [1, 1]} : vector<8x128xf32> to vector<8x32xf32>
    %cst_25 = arith.constant 1.000000e+00 : f32
    %34 = vector.broadcast %cst_25 : f32 to vector<8x32xf32>
    %35 = arith.addf %33, %34 : vector<8x32xf32>
    %cst_26 = arith.constant 5.000000e-01 : f32
    %36 = vector.broadcast %cst_26 : f32 to vector<8x32xf32>
    %37 = arith.mulf %36, %35 : vector<8x32xf32>
    %38 = arith.mulf %31, %17 : vector<8x32xf32>
    %39 = arith.mulf %26, %32 : vector<8x32xf32>
    %40 = arith.addf %38, %39 : vector<8x32xf32>
    %41 = math.tanh %40 : vector<8x32xf32>
    %42 = arith.mulf %37, %41 : vector<8x32xf32>
    %cst_27 = arith.constant dense<0.000000e+00> : vector<8x256xf32>
    %43 = tpu.matmul %42, %7, %cst_27 {dimension_numbers = #tpu.dot_dimension_numbers<[1], [0], [0], [1], [0, 0, 1, 1], [], []>} : vector<8x32xf32>, vector<32x256xf32>, vector<8x256xf32> -> vector<8x256xf32>
    %44 = vector.extract_strided_slice %43 {offsets = [0, 0], sizes = [8, 128], strides = [1, 1]} : vector<8x256xf32> to vector<8x128xf32>
    %45 = vector.extract_strided_slice %43 {offsets = [0, 128], sizes = [8, 128], strides = [1, 1]} : vector<8x256xf32> to vector<8x128xf32>
    %46 = arith.addf %45, %11 : vector<8x128xf32>
    %47 = arith.addf %46, %16 : vector<8x128xf32>
    %48 = math.tanh %47 : vector<8x128xf32>
    %49 = vector.extract_strided_slice %48 {offsets = [0, 0], sizes = [8, 32], strides = [1, 1]} : vector<8x128xf32> to vector<8x32xf32>
    %cst_28 = arith.constant 1.000000e+00 : f32
    %50 = vector.broadcast %cst_28 : f32 to vector<8x32xf32>
    %51 = arith.addf %49, %50 : vector<8x32xf32>
    %cst_29 = arith.constant 5.000000e-01 : f32
    %52 = vector.broadcast %cst_29 : f32 to vector<8x32xf32>
    %53 = arith.mulf %52, %51 : vector<8x32xf32>
    %54 = vector.extract_strided_slice %48 {offsets = [0, 32], sizes = [8, 32], strides = [1, 1]} : vector<8x128xf32> to vector<8x32xf32>
    %cst_30 = arith.constant 1.000000e+00 : f32
    %55 = vector.broadcast %cst_30 : f32 to vector<8x32xf32>
    %56 = arith.addf %54, %55 : vector<8x32xf32>
    %cst_31 = arith.constant 5.000000e-01 : f32
    %57 = vector.broadcast %cst_31 : f32 to vector<8x32xf32>
    %58 = arith.mulf %57, %56 : vector<8x32xf32>
    %59 = vector.extract_strided_slice %48 {offsets = [0, 64], sizes = [8, 32], strides = [1, 1]} : vector<8x128xf32> to vector<8x32xf32>
    %60 = vector.extract_strided_slice %48 {offsets = [0, 96], sizes = [8, 32], strides = [1, 1]} : vector<8x128xf32> to vector<8x32xf32>
    %cst_32 = arith.constant 1.000000e+00 : f32
    %61 = vector.broadcast %cst_32 : f32 to vector<8x32xf32>
    %62 = arith.addf %60, %61 : vector<8x32xf32>
    %cst_33 = arith.constant 5.000000e-01 : f32
    %63 = vector.broadcast %cst_33 : f32 to vector<8x32xf32>
    %64 = arith.mulf %63, %62 : vector<8x32xf32>
    %65 = arith.mulf %58, %18 : vector<8x32xf32>
    %66 = arith.mulf %53, %59 : vector<8x32xf32>
    %67 = arith.addf %65, %66 : vector<8x32xf32>
    %68 = math.tanh %67 : vector<8x32xf32>
    %69 = arith.mulf %64, %68 : vector<8x32xf32>
    %cst_34 = arith.constant dense<0.000000e+00> : vector<8x256xf32>
    %70 = tpu.matmul %69, %8, %cst_34 {dimension_numbers = #tpu.dot_dimension_numbers<[1], [0], [0], [1], [0, 0, 1, 1], [], []>} : vector<8x32xf32>, vector<32x256xf32>, vector<8x256xf32> -> vector<8x256xf32>
    %71 = vector.extract_strided_slice %70 {offsets = [0, 0], sizes = [8, 128], strides = [1, 1]} : vector<8x256xf32> to vector<8x128xf32>
    %72 = vector.extract_strided_slice %70 {offsets = [0, 128], sizes = [8, 128], strides = [1, 1]} : vector<8x256xf32> to vector<8x128xf32>
    %73 = arith.addf %72, %14 : vector<8x128xf32>
    %c0_35 = arith.constant 0 : index
    %c0_36 = arith.constant 0 : index
    %74 = vector.load %arg7[%c0_35, %c0_36] : memref<64x128xf32, #tpu.memory_space<vmem>>, vector<8x128xf32>
    tpu.vector_store %arg7[%c0_35, %c0_36], %73 {strides = array<i32>} : memref<64x128xf32, #tpu.memory_space<vmem>>, vector<8x128xf32>,
    %c8 = arith.constant 8 : index
    %c0_37 = arith.constant 0 : index
    %75 = vector.load %arg8[%c8, %c0_37] : memref<64x128xf32, #tpu.memory_space<vmem>>, vector<8x128xf32>
    %76 = arith.addf %75, %44 : vector<8x128xf32>
    %77 = math.tanh %76 : vector<8x128xf32>
    %78 = vector.extract_strided_slice %77 {offsets = [0, 0], sizes = [8, 32], strides = [1, 1]} : vector<8x128xf32> to vector<8x32xf32>
    %cst_38 = arith.constant 1.000000e+00 : f32
    %79 = vector.broadcast %cst_38 : f32 to vector<8x32xf32>
    %80 = arith.addf %78, %79 : vector<8x32xf32>
    %cst_39 = arith.constant 5.000000e-01 : f32
    %81 = vector.broadcast %cst_39 : f32 to vector<8x32xf32>
    %82 = arith.mulf %81, %80 : vector<8x32xf32>
    %83 = vector.extract_strided_slice %77 {offsets = [0, 32], sizes = [8, 32], strides = [1, 1]} : vector<8x128xf32> to vector<8x32xf32>
    %cst_40 = arith.constant 1.000000e+00 : f32
    %84 = vector.broadcast %cst_40 : f32 to vector<8x32xf32>
    %85 = arith.addf %83, %84 : vector<8x32xf32>
    %cst_41 = arith.constant 5.000000e-01 : f32
    %86 = vector.broadcast %cst_41 : f32 to vector<8x32xf32>
    %87 = arith.mulf %86, %85 : vector<8x32xf32>
    %88 = vector.extract_strided_slice %77 {offsets = [0, 64], sizes = [8, 32], strides = [1, 1]} : vector<8x128xf32> to vector<8x32xf32>
    %89 = vector.extract_strided_slice %77 {offsets = [0, 96], sizes = [8, 32], strides = [1, 1]} : vector<8x128xf32> to vector<8x32xf32>
    %cst_42 = arith.constant 1.000000e+00 : f32
    %90 = vector.broadcast %cst_42 : f32 to vector<8x32xf32>
    %91 = arith.addf %89, %90 : vector<8x32xf32>
    %cst_43 = arith.constant 5.000000e-01 : f32
    %92 = vector.broadcast %cst_43 : f32 to vector<8x32xf32>
    %93 = arith.mulf %92, %91 : vector<8x32xf32>
    %94 = arith.mulf %87, %40 : vector<8x32xf32>
    %95 = arith.mulf %82, %88 : vector<8x32xf32>
    %96 = arith.addf %94, %95 : vector<8x32xf32>
    %97 = math.tanh %96 : vector<8x32xf32>
    %98 = arith.mulf %93, %97 : vector<8x32xf32>
    %cst_44 = arith.constant dense<0.000000e+00> : vector<8x256xf32>
    %99 = tpu.matmul %98, %7, %cst_44 {dimension_numbers = #tpu.dot_dimension_numbers<[1], [0], [0], [1], [0, 0, 1, 1], [], []>} : vector<8x32xf32>, vector<32x256xf32>, vector<8x256xf32> -> vector<8x256xf32>
    %100 = vector.extract_strided_slice %99 {offsets = [0, 0], sizes = [8, 128], strides = [1, 1]} : vector<8x256xf32> to vector<8x128xf32>
    %101 = vector.extract_strided_slice %99 {offsets = [0, 128], sizes = [8, 128], strides = [1, 1]} : vector<8x256xf32> to vector<8x128xf32>
    %102 = arith.addf %101, %11 : vector<8x128xf32>
    %103 = arith.addf %102, %71 : vector<8x128xf32>
    %104 = math.tanh %103 : vector<8x128xf32>
    %105 = vector.extract_strided_slice %104 {offsets = [0, 0], sizes = [8, 32], strides = [1, 1]} : vector<8x128xf32> to vector<8x32xf32>
    %cst_45 = arith.constant 1.000000e+00 : f32
    %106 = vector.broadcast %cst_45 : f32 to vector<8x32xf32>
    %107 = arith.addf %105, %106 : vector<8x32xf32>
    %cst_46 = arith.constant 5.000000e-01 : f32
    %108 = vector.broadcast %cst_46 : f32 to vector<8x32xf32>
    %109 = arith.mulf %108, %107 : vector<8x32xf32>
    %110 = vector.extract_strided_slice %104 {offsets = [0, 32], sizes = [8, 32], strides = [1, 1]} : vector<8x128xf32> to vector<8x32xf32>
    %cst_47 = arith.constant 1.000000e+00 : f32
    %111 = vector.broadcast %cst_47 : f32 to vector<8x32xf32>
    %112 = arith.addf %110, %111 : vector<8x32xf32>
    %cst_48 = arith.constant 5.000000e-01 : f32
    %113 = vector.broadcast %cst_48 : f32 to vector<8x32xf32>
    %114 = arith.mulf %113, %112 : vector<8x32xf32>
    %115 = vector.extract_strided_slice %104 {offsets = [0, 64], sizes = [8, 32], strides = [1, 1]} : vector<8x128xf32> to vector<8x32xf32>
    %116 = vector.extract_strided_slice %104 {offsets = [0, 96], sizes = [8, 32], strides = [1, 1]} : vector<8x128xf32> to vector<8x32xf32>
    %cst_49 = arith.constant 1.000000e+00 : f32
    %117 = vector.broadcast %cst_49 : f32 to vector<8x32xf32>
    %118 = arith.addf %116, %117 : vector<8x32xf32>
    %cst_50 = arith.constant 5.000000e-01 : f32
    %119 = vector.broadcast %cst_50 : f32 to vector<8x32xf32>
    %120 = arith.mulf %119, %118 : vector<8x32xf32>
    %121 = arith.mulf %114, %67 : vector<8x32xf32>
    %122 = arith.mulf %109, %115 : vector<8x32xf32>
    %123 = arith.addf %121, %122 : vector<8x32xf32>
    %124 = math.tanh %123 : vector<8x32xf32>
    %125 = arith.mulf %120, %124 : vector<8x32xf32>
    %cst_51 = arith.constant dense<0.000000e+00> : vector<8x256xf32>
    %126 = tpu.matmul %125, %8, %cst_51 {dimension_numbers = #tpu.dot_dimension_numbers<[1], [0], [0], [1], [0, 0, 1, 1], [], []>} : vector<8x32xf32>, vector<32x256xf32>, vector<8x256xf32> -> vector<8x256xf32>
    %127 = vector.extract_strided_slice %126 {offsets = [0, 0], sizes = [8, 128], strides = [1, 1]} : vector<8x256xf32> to vector<8x128xf32>
    %128 = vector.extract_strided_slice %126 {offsets = [0, 128], sizes = [8, 128], strides = [1, 1]} : vector<8x256xf32> to vector<8x128xf32>
    %129 = arith.addf %128, %14 : vector<8x128xf32>
    %c8_52 = arith.constant 8 : index
    %c0_53 = arith.constant 0 : index
    %130 = vector.load %arg7[%c8_52, %c0_53] : memref<64x128xf32, #tpu.memory_space<vmem>>, vector<8x128xf32>
    tpu.vector_store %arg7[%c8_52, %c0_53], %129 {strides = array<i32>} : memref<64x128xf32, #tpu.memory_space<vmem>>, vector<8x128xf32>,
    %c16 = arith.constant 16 : index
    %c0_54 = arith.constant 0 : index
    %131 = vector.load %arg8[%c16, %c0_54] : memref<64x128xf32, #tpu.memory_space<vmem>>, vector<8x128xf32>
    %132 = arith.addf %131, %100 : vector<8x128xf32>
    %133 = math.tanh %132 : vector<8x128xf32>
    %134 = vector.extract_strided_slice %133 {offsets = [0, 0], sizes = [8, 32], strides = [1, 1]} : vector<8x128xf32> to vector<8x32xf32>
    %cst_55 = arith.constant 1.000000e+00 : f32
    %135 = vector.broadcast %cst_55 : f32 to vector<8x32xf32>
    %136 = arith.addf %134, %135 : vector<8x32xf32>
    %cst_56 = arith.constant 5.000000e-01 : f32
    %137 = vector.broadcast %cst_56 : f32 to vector<8x32xf32>
    %138 = arith.mulf %137, %136 : vector<8x32xf32>
    %139 = vector.extract_strided_slice %133 {offsets = [0, 32], sizes = [8, 32], strides = [1, 1]} : vector<8x128xf32> to vector<8x32xf32>
    %cst_57 = arith.constant 1.000000e+00 : f32
    %140 = vector.broadcast %cst_57 : f32 to vector<8x32xf32>
    %141 = arith.addf %139, %140 : vector<8x32xf32>
    %cst_58 = arith.constant 5.000000e-01 : f32
    %142 = vector.broadcast %cst_58 : f32 to vector<8x32xf32>
    %143 = arith.mulf %142, %141 : vector<8x32xf32>
    %144 = vector.extract_strided_slice %133 {offsets = [0, 64], sizes = [8, 32], strides = [1, 1]} : vector<8x128xf32> to vector<8x32xf32>
    %145 = vector.extract_strided_slice %133 {offsets = [0, 96], sizes = [8, 32], strides = [1, 1]} : vector<8x128xf32> to vector<8x32xf32>
    %cst_59 = arith.constant 1.000000e+00 : f32
    %146 = vector.broadcast %cst_59 : f32 to vector<8x32xf32>
    %147 = arith.addf %145, %146 : vector<8x32xf32>
    %cst_60 = arith.constant 5.000000e-01 : f32
    %148 = vector.broadcast %cst_60 : f32 to vector<8x32xf32>
    %149 = arith.mulf %148, %147 : vector<8x32xf32>
    %150 = arith.mulf %143, %96 : vector<8x32xf32>
    %151 = arith.mulf %138, %144 : vector<8x32xf32>
    %152 = arith.addf %150, %151 : vector<8x32xf32>
    %153 = math.tanh %152 : vector<8x32xf32>
    %154 = arith.mulf %149, %153 : vector<8x32xf32>
    %cst_61 = arith.constant dense<0.000000e+00> : vector<8x256xf32>
    %155 = tpu.matmul %154, %7, %cst_61 {dimension_numbers = #tpu.dot_dimension_numbers<[1], [0], [0], [1], [0, 0, 1, 1], [], []>} : vector<8x32xf32>, vector<32x256xf32>, vector<8x256xf32> -> vector<8x256xf32>
    %156 = vector.extract_strided_slice %155 {offsets = [0, 0], sizes = [8, 128], strides = [1, 1]} : vector<8x256xf32> to vector<8x128xf32>
    %157 = vector.extract_strided_slice %155 {offsets = [0, 128], sizes = [8, 128], strides = [1, 1]} : vector<8x256xf32> to vector<8x128xf32>
    %158 = arith.addf %157, %11 : vector<8x128xf32>
    %159 = arith.addf %158, %127 : vector<8x128xf32>
    %160 = math.tanh %159 : vector<8x128xf32>
    %161 = vector.extract_strided_slice %160 {offsets = [0, 0], sizes = [8, 32], strides = [1, 1]} : vector<8x128xf32> to vector<8x32xf32>
    %cst_62 = arith.constant 1.000000e+00 : f32
    %162 = vector.broadcast %cst_62 : f32 to vector<8x32xf32>
    %163 = arith.addf %161, %162 : vector<8x32xf32>
    %cst_63 = arith.constant 5.000000e-01 : f32
    %164 = vector.broadcast %cst_63 : f32 to vector<8x32xf32>
    %165 = arith.mulf %164, %163 : vector<8x32xf32>
    %166 = vector.extract_strided_slice %160 {offsets = [0, 32], sizes = [8, 32], strides = [1, 1]} : vector<8x128xf32> to vector<8x32xf32>
    %cst_64 = arith.constant 1.000000e+00 : f32
    %167 = vector.broadcast %cst_64 : f32 to vector<8x32xf32>
    %168 = arith.addf %166, %167 : vector<8x32xf32>
    %cst_65 = arith.constant 5.000000e-01 : f32
    %169 = vector.broadcast %cst_65 : f32 to vector<8x32xf32>
    %170 = arith.mulf %169, %168 : vector<8x32xf32>
    %171 = vector.extract_strided_slice %160 {offsets = [0, 64], sizes = [8, 32], strides = [1, 1]} : vector<8x128xf32> to vector<8x32xf32>
    %172 = vector.extract_strided_slice %160 {offsets = [0, 96], sizes = [8, 32], strides = [1, 1]} : vector<8x128xf32> to vector<8x32xf32>
    %cst_66 = arith.constant 1.000000e+00 : f32
    %173 = vector.broadcast %cst_66 : f32 to vector<8x32xf32>
    %174 = arith.addf %172, %173 : vector<8x32xf32>
    %cst_67 = arith.constant 5.000000e-01 : f32
    %175 = vector.broadcast %cst_67 : f32 to vector<8x32xf32>
    %176 = arith.mulf %175, %174 : vector<8x32xf32>
    %177 = arith.mulf %170, %123 : vector<8x32xf32>
    %178 = arith.mulf %165, %171 : vector<8x32xf32>
    %179 = arith.addf %177, %178 : vector<8x32xf32>
    %180 = math.tanh %179 : vector<8x32xf32>
    %181 = arith.mulf %176, %180 : vector<8x32xf32>
    %cst_68 = arith.constant dense<0.000000e+00> : vector<8x256xf32>
    %182 = tpu.matmul %181, %8, %cst_68 {dimension_numbers = #tpu.dot_dimension_numbers<[1], [0], [0], [1], [0, 0, 1, 1], [], []>} : vector<8x32xf32>, vector<32x256xf32>, vector<8x256xf32> -> vector<8x256xf32>
    %183 = vector.extract_strided_slice %182 {offsets = [0, 0], sizes = [8, 128], strides = [1, 1]} : vector<8x256xf32> to vector<8x128xf32>
    %184 = vector.extract_strided_slice %182 {offsets = [0, 128], sizes = [8, 128], strides = [1, 1]} : vector<8x256xf32> to vector<8x128xf32>
    %185 = arith.addf %184, %14 : vector<8x128xf32>
    %c16_69 = arith.constant 16 : index
    %c0_70 = arith.constant 0 : index
    %186 = vector.load %arg7[%c16_69, %c0_70] : memref<64x128xf32, #tpu.memory_space<vmem>>, vector<8x128xf32>
    tpu.vector_store %arg7[%c16_69, %c0_70], %185 {strides = array<i32>} : memref<64x128xf32, #tpu.memory_space<vmem>>, vector<8x128xf32>,
    %c24 = arith.constant 24 : index
    %c0_71 = arith.constant 0 : index
    %187 = vector.load %arg8[%c24, %c0_71] : memref<64x128xf32, #tpu.memory_space<vmem>>, vector<8x128xf32>
    %188 = arith.addf %187, %156 : vector<8x128xf32>
    %189 = math.tanh %188 : vector<8x128xf32>
    %190 = vector.extract_strided_slice %189 {offsets = [0, 0], sizes = [8, 32], strides = [1, 1]} : vector<8x128xf32> to vector<8x32xf32>
    %cst_72 = arith.constant 1.000000e+00 : f32
    %191 = vector.broadcast %cst_72 : f32 to vector<8x32xf32>
    %192 = arith.addf %190, %191 : vector<8x32xf32>
    %cst_73 = arith.constant 5.000000e-01 : f32
    %193 = vector.broadcast %cst_73 : f32 to vector<8x32xf32>
    %194 = arith.mulf %193, %192 : vector<8x32xf32>
    %195 = vector.extract_strided_slice %189 {offsets = [0, 32], sizes = [8, 32], strides = [1, 1]} : vector<8x128xf32> to vector<8x32xf32>
    %cst_74 = arith.constant 1.000000e+00 : f32
    %196 = vector.broadcast %cst_74 : f32 to vector<8x32xf32>
    %197 = arith.addf %195, %196 : vector<8x32xf32>
    %cst_75 = arith.constant 5.000000e-01 : f32
    %198 = vector.broadcast %cst_75 : f32 to vector<8x32xf32>
    %199 = arith.mulf %198, %197 : vector<8x32xf32>
    %200 = vector.extract_strided_slice %189 {offsets = [0, 64], sizes = [8, 32], strides = [1, 1]} : vector<8x128xf32> to vector<8x32xf32>
    %201 = vector.extract_strided_slice %189 {offsets = [0, 96], sizes = [8, 32], strides = [1, 1]} : vector<8x128xf32> to vector<8x32xf32>
    %cst_76 = arith.constant 1.000000e+00 : f32
    %202 = vector.broadcast %cst_76 : f32 to vector<8x32xf32>
    %203 = arith.addf %201, %202 : vector<8x32xf32>
    %cst_77 = arith.constant 5.000000e-01 : f32
    %204 = vector.broadcast %cst_77 : f32 to vector<8x32xf32>
    %205 = arith.mulf %204, %203 : vector<8x32xf32>
    %206 = arith.mulf %199, %152 : vector<8x32xf32>
    %207 = arith.mulf %194, %200 : vector<8x32xf32>
    %208 = arith.addf %206, %207 : vector<8x32xf32>
    %209 = math.tanh %208 : vector<8x32xf32>
    %210 = arith.mulf %205, %209 : vector<8x32xf32>
    %cst_78 = arith.constant dense<0.000000e+00> : vector<8x256xf32>
    %211 = tpu.matmul %210, %7, %cst_78 {dimension_numbers = #tpu.dot_dimension_numbers<[1], [0], [0], [1], [0, 0, 1, 1], [], []>} : vector<8x32xf32>, vector<32x256xf32>, vector<8x256xf32> -> vector<8x256xf32>
    %212 = vector.extract_strided_slice %211 {offsets = [0, 0], sizes = [8, 128], strides = [1, 1]} : vector<8x256xf32> to vector<8x128xf32>
    %213 = vector.extract_strided_slice %211 {offsets = [0, 128], sizes = [8, 128], strides = [1, 1]} : vector<8x256xf32> to vector<8x128xf32>
    %214 = arith.addf %213, %11 : vector<8x128xf32>
    %215 = arith.addf %214, %183 : vector<8x128xf32>
    %216 = math.tanh %215 : vector<8x128xf32>
    %217 = vector.extract_strided_slice %216 {offsets = [0, 0], sizes = [8, 32], strides = [1, 1]} : vector<8x128xf32> to vector<8x32xf32>
    %cst_79 = arith.constant 1.000000e+00 : f32
    %218 = vector.broadcast %cst_79 : f32 to vector<8x32xf32>
    %219 = arith.addf %217, %218 : vector<8x32xf32>
    %cst_80 = arith.constant 5.000000e-01 : f32
    %220 = vector.broadcast %cst_80 : f32 to vector<8x32xf32>
    %221 = arith.mulf %220, %219 : vector<8x32xf32>
    %222 = vector.extract_strided_slice %216 {offsets = [0, 32], sizes = [8, 32], strides = [1, 1]} : vector<8x128xf32> to vector<8x32xf32>
    %cst_81 = arith.constant 1.000000e+00 : f32
    %223 = vector.broadcast %cst_81 : f32 to vector<8x32xf32>
    %224 = arith.addf %222, %223 : vector<8x32xf32>
    %cst_82 = arith.constant 5.000000e-01 : f32
    %225 = vector.broadcast %cst_82 : f32 to vector<8x32xf32>
    %226 = arith.mulf %225, %224 : vector<8x32xf32>
    %227 = vector.extract_strided_slice %216 {offsets = [0, 64], sizes = [8, 32], strides = [1, 1]} : vector<8x128xf32> to vector<8x32xf32>
    %228 = vector.extract_strided_slice %216 {offsets = [0, 96], sizes = [8, 32], strides = [1, 1]} : vector<8x128xf32> to vector<8x32xf32>
    %cst_83 = arith.constant 1.000000e+00 : f32
    %229 = vector.broadcast %cst_83 : f32 to vector<8x32xf32>
    %230 = arith.addf %228, %229 : vector<8x32xf32>
    %cst_84 = arith.constant 5.000000e-01 : f32
    %231 = vector.broadcast %cst_84 : f32 to vector<8x32xf32>
    %232 = arith.mulf %231, %230 : vector<8x32xf32>
    %233 = arith.mulf %226, %179 : vector<8x32xf32>
    %234 = arith.mulf %221, %227 : vector<8x32xf32>
    %235 = arith.addf %233, %234 : vector<8x32xf32>
    %236 = math.tanh %235 : vector<8x32xf32>
    %237 = arith.mulf %232, %236 : vector<8x32xf32>
    %cst_85 = arith.constant dense<0.000000e+00> : vector<8x256xf32>
    %238 = tpu.matmul %237, %8, %cst_85 {dimension_numbers = #tpu.dot_dimension_numbers<[1], [0], [0], [1], [0, 0, 1, 1], [], []>} : vector<8x32xf32>, vector<32x256xf32>, vector<8x256xf32> -> vector<8x256xf32>
    %239 = vector.extract_strided_slice %238 {offsets = [0, 0], sizes = [8, 128], strides = [1, 1]} : vector<8x256xf32> to vector<8x128xf32>
    %240 = vector.extract_strided_slice %238 {offsets = [0, 128], sizes = [8, 128], strides = [1, 1]} : vector<8x256xf32> to vector<8x128xf32>
    %241 = arith.addf %240, %14 : vector<8x128xf32>
    %c24_86 = arith.constant 24 : index
    %c0_87 = arith.constant 0 : index
    %242 = vector.load %arg7[%c24_86, %c0_87] : memref<64x128xf32, #tpu.memory_space<vmem>>, vector<8x128xf32>
    tpu.vector_store %arg7[%c24_86, %c0_87], %241 {strides = array<i32>} : memref<64x128xf32, #tpu.memory_space<vmem>>, vector<8x128xf32>,
    %c32 = arith.constant 32 : index
    %c0_88 = arith.constant 0 : index
    %243 = vector.load %arg8[%c32, %c0_88] : memref<64x128xf32, #tpu.memory_space<vmem>>, vector<8x128xf32>
    %244 = arith.addf %243, %212 : vector<8x128xf32>
    %245 = math.tanh %244 : vector<8x128xf32>
    %246 = vector.extract_strided_slice %245 {offsets = [0, 0], sizes = [8, 32], strides = [1, 1]} : vector<8x128xf32> to vector<8x32xf32>
    %cst_89 = arith.constant 1.000000e+00 : f32
    %247 = vector.broadcast %cst_89 : f32 to vector<8x32xf32>
    %248 = arith.addf %246, %247 : vector<8x32xf32>
    %cst_90 = arith.constant 5.000000e-01 : f32
    %249 = vector.broadcast %cst_90 : f32 to vector<8x32xf32>
    %250 = arith.mulf %249, %248 : vector<8x32xf32>
    %251 = vector.extract_strided_slice %245 {offsets = [0, 32], sizes = [8, 32], strides = [1, 1]} : vector<8x128xf32> to vector<8x32xf32>
    %cst_91 = arith.constant 1.000000e+00 : f32
    %252 = vector.broadcast %cst_91 : f32 to vector<8x32xf32>
    %253 = arith.addf %251, %252 : vector<8x32xf32>
    %cst_92 = arith.constant 5.000000e-01 : f32
    %254 = vector.broadcast %cst_92 : f32 to vector<8x32xf32>
    %255 = arith.mulf %254, %253 : vector<8x32xf32>
    %256 = vector.extract_strided_slice %245 {offsets = [0, 64], sizes = [8, 32], strides = [1, 1]} : vector<8x128xf32> to vector<8x32xf32>
    %257 = vector.extract_strided_slice %245 {offsets = [0, 96], sizes = [8, 32], strides = [1, 1]} : vector<8x128xf32> to vector<8x32xf32>
    %cst_93 = arith.constant 1.000000e+00 : f32
    %258 = vector.broadcast %cst_93 : f32 to vector<8x32xf32>
    %259 = arith.addf %257, %258 : vector<8x32xf32>
    %cst_94 = arith.constant 5.000000e-01 : f32
    %260 = vector.broadcast %cst_94 : f32 to vector<8x32xf32>
    %261 = arith.mulf %260, %259 : vector<8x32xf32>
    %262 = arith.mulf %255, %208 : vector<8x32xf32>
    %263 = arith.mulf %250, %256 : vector<8x32xf32>
    %264 = arith.addf %262, %263 : vector<8x32xf32>
    %265 = math.tanh %264 : vector<8x32xf32>
    %266 = arith.mulf %261, %265 : vector<8x32xf32>
    %cst_95 = arith.constant dense<0.000000e+00> : vector<8x256xf32>
    %267 = tpu.matmul %266, %7, %cst_95 {dimension_numbers = #tpu.dot_dimension_numbers<[1], [0], [0], [1], [0, 0, 1, 1], [], []>} : vector<8x32xf32>, vector<32x256xf32>, vector<8x256xf32> -> vector<8x256xf32>
    %268 = vector.extract_strided_slice %267 {offsets = [0, 0], sizes = [8, 128], strides = [1, 1]} : vector<8x256xf32> to vector<8x128xf32>
    %269 = vector.extract_strided_slice %267 {offsets = [0, 128], sizes = [8, 128], strides = [1, 1]} : vector<8x256xf32> to vector<8x128xf32>
    %270 = arith.addf %269, %11 : vector<8x128xf32>
    %271 = arith.addf %270, %239 : vector<8x128xf32>
    %272 = math.tanh %271 : vector<8x128xf32>
    %273 = vector.extract_strided_slice %272 {offsets = [0, 0], sizes = [8, 32], strides = [1, 1]} : vector<8x128xf32> to vector<8x32xf32>
    %cst_96 = arith.constant 1.000000e+00 : f32
    %274 = vector.broadcast %cst_96 : f32 to vector<8x32xf32>
    %275 = arith.addf %273, %274 : vector<8x32xf32>
    %cst_97 = arith.constant 5.000000e-01 : f32
    %276 = vector.broadcast %cst_97 : f32 to vector<8x32xf32>
    %277 = arith.mulf %276, %275 : vector<8x32xf32>
    %278 = vector.extract_strided_slice %272 {offsets = [0, 32], sizes = [8, 32], strides = [1, 1]} : vector<8x128xf32> to vector<8x32xf32>
    %cst_98 = arith.constant 1.000000e+00 : f32
    %279 = vector.broadcast %cst_98 : f32 to vector<8x32xf32>
    %280 = arith.addf %278, %279 : vector<8x32xf32>
    %cst_99 = arith.constant 5.000000e-01 : f32
    %281 = vector.broadcast %cst_99 : f32 to vector<8x32xf32>
    %282 = arith.mulf %281, %280 : vector<8x32xf32>
    %283 = vector.extract_strided_slice %272 {offsets = [0, 64], sizes = [8, 32], strides = [1, 1]} : vector<8x128xf32> to vector<8x32xf32>
    %284 = vector.extract_strided_slice %272 {offsets = [0, 96], sizes = [8, 32], strides = [1, 1]} : vector<8x128xf32> to vector<8x32xf32>
    %cst_100 = arith.constant 1.000000e+00 : f32
    %285 = vector.broadcast %cst_100 : f32 to vector<8x32xf32>
    %286 = arith.addf %284, %285 : vector<8x32xf32>
    %cst_101 = arith.constant 5.000000e-01 : f32
    %287 = vector.broadcast %cst_101 : f32 to vector<8x32xf32>
    %288 = arith.mulf %287, %286 : vector<8x32xf32>
    %289 = arith.mulf %282, %235 : vector<8x32xf32>
    %290 = arith.mulf %277, %283 : vector<8x32xf32>
    %291 = arith.addf %289, %290 : vector<8x32xf32>
    %292 = math.tanh %291 : vector<8x32xf32>
    %293 = arith.mulf %288, %292 : vector<8x32xf32>
    %cst_102 = arith.constant dense<0.000000e+00> : vector<8x256xf32>
    %294 = tpu.matmul %293, %8, %cst_102 {dimension_numbers = #tpu.dot_dimension_numbers<[1], [0], [0], [1], [0, 0, 1, 1], [], []>} : vector<8x32xf32>, vector<32x256xf32>, vector<8x256xf32> -> vector<8x256xf32>
    %295 = vector.extract_strided_slice %294 {offsets = [0, 0], sizes = [8, 128], strides = [1, 1]} : vector<8x256xf32> to vector<8x128xf32>
    %296 = vector.extract_strided_slice %294 {offsets = [0, 128], sizes = [8, 128], strides = [1, 1]} : vector<8x256xf32> to vector<8x128xf32>
    %297 = arith.addf %296, %14 : vector<8x128xf32>
    %c32_103 = arith.constant 32 : index
    %c0_104 = arith.constant 0 : index
    %298 = vector.load %arg7[%c32_103, %c0_104] : memref<64x128xf32, #tpu.memory_space<vmem>>, vector<8x128xf32>
    tpu.vector_store %arg7[%c32_103, %c0_104], %297 {strides = array<i32>} : memref<64x128xf32, #tpu.memory_space<vmem>>, vector<8x128xf32>,
    %c40 = arith.constant 40 : index
    %c0_105 = arith.constant 0 : index
    %299 = vector.load %arg8[%c40, %c0_105] : memref<64x128xf32, #tpu.memory_space<vmem>>, vector<8x128xf32>
    %300 = arith.addf %299, %268 : vector<8x128xf32>
    %301 = math.tanh %300 : vector<8x128xf32>
    %302 = vector.extract_strided_slice %301 {offsets = [0, 0], sizes = [8, 32], strides = [1, 1]} : vector<8x128xf32> to vector<8x32xf32>
    %cst_106 = arith.constant 1.000000e+00 : f32
    %303 = vector.broadcast %cst_106 : f32 to vector<8x32xf32>
    %304 = arith.addf %302, %303 : vector<8x32xf32>
    %cst_107 = arith.constant 5.000000e-01 : f32
    %305 = vector.broadcast %cst_107 : f32 to vector<8x32xf32>
    %306 = arith.mulf %305, %304 : vector<8x32xf32>
    %307 = vector.extract_strided_slice %301 {offsets = [0, 32], sizes = [8, 32], strides = [1, 1]} : vector<8x128xf32> to vector<8x32xf32>
    %cst_108 = arith.constant 1.000000e+00 : f32
    %308 = vector.broadcast %cst_108 : f32 to vector<8x32xf32>
    %309 = arith.addf %307, %308 : vector<8x32xf32>
    %cst_109 = arith.constant 5.000000e-01 : f32
    %310 = vector.broadcast %cst_109 : f32 to vector<8x32xf32>
    %311 = arith.mulf %310, %309 : vector<8x32xf32>
    %312 = vector.extract_strided_slice %301 {offsets = [0, 64], sizes = [8, 32], strides = [1, 1]} : vector<8x128xf32> to vector<8x32xf32>
    %313 = vector.extract_strided_slice %301 {offsets = [0, 96], sizes = [8, 32], strides = [1, 1]} : vector<8x128xf32> to vector<8x32xf32>
    %cst_110 = arith.constant 1.000000e+00 : f32
    %314 = vector.broadcast %cst_110 : f32 to vector<8x32xf32>
    %315 = arith.addf %313, %314 : vector<8x32xf32>
    %cst_111 = arith.constant 5.000000e-01 : f32
    %316 = vector.broadcast %cst_111 : f32 to vector<8x32xf32>
    %317 = arith.mulf %316, %315 : vector<8x32xf32>
    %318 = arith.mulf %311, %264 : vector<8x32xf32>
    %319 = arith.mulf %306, %312 : vector<8x32xf32>
    %320 = arith.addf %318, %319 : vector<8x32xf32>
    %321 = math.tanh %320 : vector<8x32xf32>
    %322 = arith.mulf %317, %321 : vector<8x32xf32>
    %cst_112 = arith.constant dense<0.000000e+00> : vector<8x256xf32>
    %323 = tpu.matmul %322, %7, %cst_112 {dimension_numbers = #tpu.dot_dimension_numbers<[1], [0], [0], [1], [0, 0, 1, 1], [], []>} : vector<8x32xf32>, vector<32x256xf32>, vector<8x256xf32> -> vector<8x256xf32>
    %324 = vector.extract_strided_slice %323 {offsets = [0, 0], sizes = [8, 128], strides = [1, 1]} : vector<8x256xf32> to vector<8x128xf32>
    %325 = vector.extract_strided_slice %323 {offsets = [0, 128], sizes = [8, 128], strides = [1, 1]} : vector<8x256xf32> to vector<8x128xf32>
    %326 = arith.addf %325, %11 : vector<8x128xf32>
    %327 = arith.addf %326, %295 : vector<8x128xf32>
    %328 = math.tanh %327 : vector<8x128xf32>
    %329 = vector.extract_strided_slice %328 {offsets = [0, 0], sizes = [8, 32], strides = [1, 1]} : vector<8x128xf32> to vector<8x32xf32>
    %cst_113 = arith.constant 1.000000e+00 : f32
    %330 = vector.broadcast %cst_113 : f32 to vector<8x32xf32>
    %331 = arith.addf %329, %330 : vector<8x32xf32>
    %cst_114 = arith.constant 5.000000e-01 : f32
    %332 = vector.broadcast %cst_114 : f32 to vector<8x32xf32>
    %333 = arith.mulf %332, %331 : vector<8x32xf32>
    %334 = vector.extract_strided_slice %328 {offsets = [0, 32], sizes = [8, 32], strides = [1, 1]} : vector<8x128xf32> to vector<8x32xf32>
    %cst_115 = arith.constant 1.000000e+00 : f32
    %335 = vector.broadcast %cst_115 : f32 to vector<8x32xf32>
    %336 = arith.addf %334, %335 : vector<8x32xf32>
    %cst_116 = arith.constant 5.000000e-01 : f32
    %337 = vector.broadcast %cst_116 : f32 to vector<8x32xf32>
    %338 = arith.mulf %337, %336 : vector<8x32xf32>
    %339 = vector.extract_strided_slice %328 {offsets = [0, 64], sizes = [8, 32], strides = [1, 1]} : vector<8x128xf32> to vector<8x32xf32>
    %340 = vector.extract_strided_slice %328 {offsets = [0, 96], sizes = [8, 32], strides = [1, 1]} : vector<8x128xf32> to vector<8x32xf32>
    %cst_117 = arith.constant 1.000000e+00 : f32
    %341 = vector.broadcast %cst_117 : f32 to vector<8x32xf32>
    %342 = arith.addf %340, %341 : vector<8x32xf32>
    %cst_118 = arith.constant 5.000000e-01 : f32
    %343 = vector.broadcast %cst_118 : f32 to vector<8x32xf32>
    %344 = arith.mulf %343, %342 : vector<8x32xf32>
    %345 = arith.mulf %338, %291 : vector<8x32xf32>
    %346 = arith.mulf %333, %339 : vector<8x32xf32>
    %347 = arith.addf %345, %346 : vector<8x32xf32>
    %348 = math.tanh %347 : vector<8x32xf32>
    %349 = arith.mulf %344, %348 : vector<8x32xf32>
    %cst_119 = arith.constant dense<0.000000e+00> : vector<8x256xf32>
    %350 = tpu.matmul %349, %8, %cst_119 {dimension_numbers = #tpu.dot_dimension_numbers<[1], [0], [0], [1], [0, 0, 1, 1], [], []>} : vector<8x32xf32>, vector<32x256xf32>, vector<8x256xf32> -> vector<8x256xf32>
    %351 = vector.extract_strided_slice %350 {offsets = [0, 0], sizes = [8, 128], strides = [1, 1]} : vector<8x256xf32> to vector<8x128xf32>
    %352 = vector.extract_strided_slice %350 {offsets = [0, 128], sizes = [8, 128], strides = [1, 1]} : vector<8x256xf32> to vector<8x128xf32>
    %353 = arith.addf %352, %14 : vector<8x128xf32>
    %c40_120 = arith.constant 40 : index
    %c0_121 = arith.constant 0 : index
    %354 = vector.load %arg7[%c40_120, %c0_121] : memref<64x128xf32, #tpu.memory_space<vmem>>, vector<8x128xf32>
    tpu.vector_store %arg7[%c40_120, %c0_121], %353 {strides = array<i32>} : memref<64x128xf32, #tpu.memory_space<vmem>>, vector<8x128xf32>,
    %c48 = arith.constant 48 : index
    %c0_122 = arith.constant 0 : index
    %355 = vector.load %arg8[%c48, %c0_122] : memref<64x128xf32, #tpu.memory_space<vmem>>, vector<8x128xf32>
    %356 = arith.addf %355, %324 : vector<8x128xf32>
    %357 = math.tanh %356 : vector<8x128xf32>
    %358 = vector.extract_strided_slice %357 {offsets = [0, 0], sizes = [8, 32], strides = [1, 1]} : vector<8x128xf32> to vector<8x32xf32>
    %cst_123 = arith.constant 1.000000e+00 : f32
    %359 = vector.broadcast %cst_123 : f32 to vector<8x32xf32>
    %360 = arith.addf %358, %359 : vector<8x32xf32>
    %cst_124 = arith.constant 5.000000e-01 : f32
    %361 = vector.broadcast %cst_124 : f32 to vector<8x32xf32>
    %362 = arith.mulf %361, %360 : vector<8x32xf32>
    %363 = vector.extract_strided_slice %357 {offsets = [0, 32], sizes = [8, 32], strides = [1, 1]} : vector<8x128xf32> to vector<8x32xf32>
    %cst_125 = arith.constant 1.000000e+00 : f32
    %364 = vector.broadcast %cst_125 : f32 to vector<8x32xf32>
    %365 = arith.addf %363, %364 : vector<8x32xf32>
    %cst_126 = arith.constant 5.000000e-01 : f32
    %366 = vector.broadcast %cst_126 : f32 to vector<8x32xf32>
    %367 = arith.mulf %366, %365 : vector<8x32xf32>
    %368 = vector.extract_strided_slice %357 {offsets = [0, 64], sizes = [8, 32], strides = [1, 1]} : vector<8x128xf32> to vector<8x32xf32>
    %369 = vector.extract_strided_slice %357 {offsets = [0, 96], sizes = [8, 32], strides = [1, 1]} : vector<8x128xf32> to vector<8x32xf32>
    %cst_127 = arith.constant 1.000000e+00 : f32
    %370 = vector.broadcast %cst_127 : f32 to vector<8x32xf32>
    %371 = arith.addf %369, %370 : vector<8x32xf32>
    %cst_128 = arith.constant 5.000000e-01 : f32
    %372 = vector.broadcast %cst_128 : f32 to vector<8x32xf32>
    %373 = arith.mulf %372, %371 : vector<8x32xf32>
    %374 = arith.mulf %367, %320 : vector<8x32xf32>
    %375 = arith.mulf %362, %368 : vector<8x32xf32>
    %376 = arith.addf %374, %375 : vector<8x32xf32>
    %377 = math.tanh %376 : vector<8x32xf32>
    %378 = arith.mulf %373, %377 : vector<8x32xf32>
    %cst_129 = arith.constant dense<0.000000e+00> : vector<8x256xf32>
    %379 = tpu.matmul %378, %7, %cst_129 {dimension_numbers = #tpu.dot_dimension_numbers<[1], [0], [0], [1], [0, 0, 1, 1], [], []>} : vector<8x32xf32>, vector<32x256xf32>, vector<8x256xf32> -> vector<8x256xf32>
    %380 = vector.extract_strided_slice %379 {offsets = [0, 0], sizes = [8, 128], strides = [1, 1]} : vector<8x256xf32> to vector<8x128xf32>
    %381 = vector.extract_strided_slice %379 {offsets = [0, 128], sizes = [8, 128], strides = [1, 1]} : vector<8x256xf32> to vector<8x128xf32>
    %382 = arith.addf %381, %11 : vector<8x128xf32>
    %383 = arith.addf %382, %351 : vector<8x128xf32>
    %384 = math.tanh %383 : vector<8x128xf32>
    %385 = vector.extract_strided_slice %384 {offsets = [0, 0], sizes = [8, 32], strides = [1, 1]} : vector<8x128xf32> to vector<8x32xf32>
    %cst_130 = arith.constant 1.000000e+00 : f32
    %386 = vector.broadcast %cst_130 : f32 to vector<8x32xf32>
    %387 = arith.addf %385, %386 : vector<8x32xf32>
    %cst_131 = arith.constant 5.000000e-01 : f32
    %388 = vector.broadcast %cst_131 : f32 to vector<8x32xf32>
    %389 = arith.mulf %388, %387 : vector<8x32xf32>
    %390 = vector.extract_strided_slice %384 {offsets = [0, 32], sizes = [8, 32], strides = [1, 1]} : vector<8x128xf32> to vector<8x32xf32>
    %cst_132 = arith.constant 1.000000e+00 : f32
    %391 = vector.broadcast %cst_132 : f32 to vector<8x32xf32>
    %392 = arith.addf %390, %391 : vector<8x32xf32>
    %cst_133 = arith.constant 5.000000e-01 : f32
    %393 = vector.broadcast %cst_133 : f32 to vector<8x32xf32>
    %394 = arith.mulf %393, %392 : vector<8x32xf32>
    %395 = vector.extract_strided_slice %384 {offsets = [0, 64], sizes = [8, 32], strides = [1, 1]} : vector<8x128xf32> to vector<8x32xf32>
    %396 = vector.extract_strided_slice %384 {offsets = [0, 96], sizes = [8, 32], strides = [1, 1]} : vector<8x128xf32> to vector<8x32xf32>
    %cst_134 = arith.constant 1.000000e+00 : f32
    %397 = vector.broadcast %cst_134 : f32 to vector<8x32xf32>
    %398 = arith.addf %396, %397 : vector<8x32xf32>
    %cst_135 = arith.constant 5.000000e-01 : f32
    %399 = vector.broadcast %cst_135 : f32 to vector<8x32xf32>
    %400 = arith.mulf %399, %398 : vector<8x32xf32>
    %401 = arith.mulf %394, %347 : vector<8x32xf32>
    %402 = arith.mulf %389, %395 : vector<8x32xf32>
    %403 = arith.addf %401, %402 : vector<8x32xf32>
    %404 = math.tanh %403 : vector<8x32xf32>
    %405 = arith.mulf %400, %404 : vector<8x32xf32>
    %cst_136 = arith.constant dense<0.000000e+00> : vector<8x256xf32>
    %406 = tpu.matmul %405, %8, %cst_136 {dimension_numbers = #tpu.dot_dimension_numbers<[1], [0], [0], [1], [0, 0, 1, 1], [], []>} : vector<8x32xf32>, vector<32x256xf32>, vector<8x256xf32> -> vector<8x256xf32>
    %407 = vector.extract_strided_slice %406 {offsets = [0, 0], sizes = [8, 128], strides = [1, 1]} : vector<8x256xf32> to vector<8x128xf32>
    %408 = vector.extract_strided_slice %406 {offsets = [0, 128], sizes = [8, 128], strides = [1, 1]} : vector<8x256xf32> to vector<8x128xf32>
    %409 = arith.addf %408, %14 : vector<8x128xf32>
    %c48_137 = arith.constant 48 : index
    %c0_138 = arith.constant 0 : index
    %410 = vector.load %arg7[%c48_137, %c0_138] : memref<64x128xf32, #tpu.memory_space<vmem>>, vector<8x128xf32>
    tpu.vector_store %arg7[%c48_137, %c0_138], %409 {strides = array<i32>} : memref<64x128xf32, #tpu.memory_space<vmem>>, vector<8x128xf32>,
    %c56 = arith.constant 56 : index
    %c0_139 = arith.constant 0 : index
    %411 = vector.load %arg8[%c56, %c0_139] : memref<64x128xf32, #tpu.memory_space<vmem>>, vector<8x128xf32>
    %412 = arith.addf %411, %380 : vector<8x128xf32>
    %413 = math.tanh %412 : vector<8x128xf32>
    %414 = vector.extract_strided_slice %413 {offsets = [0, 0], sizes = [8, 32], strides = [1, 1]} : vector<8x128xf32> to vector<8x32xf32>
    %cst_140 = arith.constant 1.000000e+00 : f32
    %415 = vector.broadcast %cst_140 : f32 to vector<8x32xf32>
    %416 = arith.addf %414, %415 : vector<8x32xf32>
    %cst_141 = arith.constant 5.000000e-01 : f32
    %417 = vector.broadcast %cst_141 : f32 to vector<8x32xf32>
    %418 = arith.mulf %417, %416 : vector<8x32xf32>
    %419 = vector.extract_strided_slice %413 {offsets = [0, 32], sizes = [8, 32], strides = [1, 1]} : vector<8x128xf32> to vector<8x32xf32>
    %cst_142 = arith.constant 1.000000e+00 : f32
    %420 = vector.broadcast %cst_142 : f32 to vector<8x32xf32>
    %421 = arith.addf %419, %420 : vector<8x32xf32>
    %cst_143 = arith.constant 5.000000e-01 : f32
    %422 = vector.broadcast %cst_143 : f32 to vector<8x32xf32>
    %423 = arith.mulf %422, %421 : vector<8x32xf32>
    %424 = vector.extract_strided_slice %413 {offsets = [0, 64], sizes = [8, 32], strides = [1, 1]} : vector<8x128xf32> to vector<8x32xf32>
    %425 = vector.extract_strided_slice %413 {offsets = [0, 96], sizes = [8, 32], strides = [1, 1]} : vector<8x128xf32> to vector<8x32xf32>
    %cst_144 = arith.constant 1.000000e+00 : f32
    %426 = vector.broadcast %cst_144 : f32 to vector<8x32xf32>
    %427 = arith.addf %425, %426 : vector<8x32xf32>
    %cst_145 = arith.constant 5.000000e-01 : f32
    %428 = vector.broadcast %cst_145 : f32 to vector<8x32xf32>
    %429 = arith.mulf %428, %427 : vector<8x32xf32>
    %430 = arith.mulf %423, %376 : vector<8x32xf32>
    %431 = arith.mulf %418, %424 : vector<8x32xf32>
    %432 = arith.addf %430, %431 : vector<8x32xf32>
    %433 = math.tanh %432 : vector<8x32xf32>
    %434 = arith.mulf %429, %433 : vector<8x32xf32>
    %cst_146 = arith.constant dense<0.000000e+00> : vector<8x256xf32>
    %435 = tpu.matmul %434, %7, %cst_146 {dimension_numbers = #tpu.dot_dimension_numbers<[1], [0], [0], [1], [0, 0, 1, 1], [], []>} : vector<8x32xf32>, vector<32x256xf32>, vector<8x256xf32> -> vector<8x256xf32>
    %436 = vector.extract_strided_slice %435 {offsets = [0, 128], sizes = [8, 128], strides = [1, 1]} : vector<8x256xf32> to vector<8x128xf32>
    %437 = arith.addf %436, %11 : vector<8x128xf32>
    %438 = arith.addf %437, %407 : vector<8x128xf32>
    %439 = math.tanh %438 : vector<8x128xf32>
    %440 = vector.extract_strided_slice %439 {offsets = [0, 0], sizes = [8, 32], strides = [1, 1]} : vector<8x128xf32> to vector<8x32xf32>
    %cst_147 = arith.constant 1.000000e+00 : f32
    %441 = vector.broadcast %cst_147 : f32 to vector<8x32xf32>
    %442 = arith.addf %440, %441 : vector<8x32xf32>
    %cst_148 = arith.constant 5.000000e-01 : f32
    %443 = vector.broadcast %cst_148 : f32 to vector<8x32xf32>
    %444 = arith.mulf %443, %442 : vector<8x32xf32>
    %445 = vector.extract_strided_slice %439 {offsets = [0, 32], sizes = [8, 32], strides = [1, 1]} : vector<8x128xf32> to vector<8x32xf32>
    %cst_149 = arith.constant 1.000000e+00 : f32
    %446 = vector.broadcast %cst_149 : f32 to vector<8x32xf32>
    %447 = arith.addf %445, %446 : vector<8x32xf32>
    %cst_150 = arith.constant 5.000000e-01 : f32
    %448 = vector.broadcast %cst_150 : f32 to vector<8x32xf32>
    %449 = arith.mulf %448, %447 : vector<8x32xf32>
    %450 = vector.extract_strided_slice %439 {offsets = [0, 64], sizes = [8, 32], strides = [1, 1]} : vector<8x128xf32> to vector<8x32xf32>
    %451 = vector.extract_strided_slice %439 {offsets = [0, 96], sizes = [8, 32], strides = [1, 1]} : vector<8x128xf32> to vector<8x32xf32>
    %cst_151 = arith.constant 1.000000e+00 : f32
    %452 = vector.broadcast %cst_151 : f32 to vector<8x32xf32>
    %453 = arith.addf %451, %452 : vector<8x32xf32>
    %cst_152 = arith.constant 5.000000e-01 : f32
    %454 = vector.broadcast %cst_152 : f32 to vector<8x32xf32>
    %455 = arith.mulf %454, %453 : vector<8x32xf32>
    %456 = arith.mulf %449, %403 : vector<8x32xf32>
    %457 = arith.mulf %444, %450 : vector<8x32xf32>
    %458 = arith.addf %456, %457 : vector<8x32xf32>
    %459 = math.tanh %458 : vector<8x32xf32>
    %460 = arith.mulf %455, %459 : vector<8x32xf32>
    %cst_153 = arith.constant dense<0.000000e+00> : vector<8x256xf32>
    %461 = tpu.matmul %460, %8, %cst_153 {dimension_numbers = #tpu.dot_dimension_numbers<[1], [0], [0], [1], [0, 0, 1, 1], [], []>} : vector<8x32xf32>, vector<32x256xf32>, vector<8x256xf32> -> vector<8x256xf32>
    %462 = vector.extract_strided_slice %461 {offsets = [0, 128], sizes = [8, 128], strides = [1, 1]} : vector<8x256xf32> to vector<8x128xf32>
    %463 = arith.addf %462, %14 : vector<8x128xf32>
    %c56_154 = arith.constant 56 : index
    %c0_155 = arith.constant 0 : index
    %464 = vector.load %arg7[%c56_154, %c0_155] : memref<64x128xf32, #tpu.memory_space<vmem>>, vector<8x128xf32>
    tpu.vector_store %arg7[%c56_154, %c0_155], %463 {strides = array<i32>} : memref<64x128xf32, #tpu.memory_space<vmem>>, vector<8x128xf32>,
    return
  }
}

</mosaic_0001>

<bundles_post_ra>
// kernel: critic_forward.1
= control target key start
LH: loop header
LB: loop body
LE: loop exit
PB: predicated region body
PF: predicated region fallthrough
CT: control target
= control target key end

     0   :  { %vm67_vm0 = vcmask 1045504   ;;  %vm42_vm1 = vcmask 48128   ;;  %s1920_s9 = smov 32   ;;  %v1921_v18 = vmov 0.0   ;;  %vm239_vm2 = vcmask 261120   ;;  %s2427_s1 = inlined_call_operand.vmem [shape: f32[6,128], index: 1, kind: input, shape index: {}]   ;;  %s2428_s0 = inlined_call_operand.vmem [shape: f32[64,6], index: 0, kind: input, shape index: {}]   ;;  %s2429_s2 = inlined_call_operand.vmem [shape: f32[1,128], index: 2, kind: input, shape index: {}]   ;;  %s2430_s3 = inlined_call_operand.vmem [shape: f32[32,256], index: 3, kind: input, shape index: {}]   ;;  %s2431_s4 = inlined_call_operand.vmem [shape: f32[1,128], index: 4, kind: input, shape index: {}]   ;;  %s2432_s5 = inlined_call_operand.vmem [shape: f32[32,256], index: 5, kind: input, shape index: {}]   ;;  %s2433_s6 = inlined_call_operand.vmem [shape: f32[1,128], index: 6, kind: input, shape index: {}]   ;;  %s2434_s7 = inlined_call_operand.vmem [shape: f32[64,128], index: 7, kind: output, shape index: {}]  }
   0x1   :  { %v34_v0 = vld [vmem:[%s2427_s1] sm:$0x3f]  ;;  %v27_v2 = vld [vmem:[%s2428_s0 + $0x8] sm:$0xff]  ;;  %s1919_s1 = smov 64   ;;  %v1984_v15 = vld [vmem:[%s2430_s3 + $0x38] sm:$0xff]  ;;  %306 = vmatprep.mubr.f32.mxu1 %v1921_v18 }
   0x2   :  { %v26_v1 = vld [vmem:[%s2428_s0] sm:$0xff]  ;;  %1838 = vmatprep.subr.msk.mxu0 %vm67_vm0, %v34_v0  ;;  %v1989_v16 = vld [vmem:[%s2430_s3 + $0x30] sm:$0xff]  ;;  %v1994_v17 = vld [vmem:[%s2430_s3 + $0x28] sm:$0xff]  ;;  %266 = vmatprep.subr.mxu1 %v1984_v15 }
   0x3   :  { %1840 = vmatprep.mubr.msk.f32.mxu0 %vm42_vm1, %v26_v1  ;;  %1839 = vmatpush3.msk.msra.mxu0 %vm67_vm0, %v34_v0  ;;  %v1976_v4 = vld [vmem:[%s2429_s2] ss:$0 sm:$0xff]  ;;  %v2008_v20 = vld [vmem:[%s2430_s3 + $0x18] sm:$0xff]  ;;  %v2015_v21 = vld [vmem:[%s2430_s3 + $0x10] sm:$0xff] }
   0x4   :  { %1841 = vmatmul.mubr.msk.f32.vlgmr.msra.gmra.mxu0 %vm42_vm1, %v27_v2  ;;  %v2001_v19 = vld [vmem:[%s2430_s3 + $0x20] sm:$0xff]  ;;  %464 = vmatprep.subr.mxu0 %v1984_v15  ;;  %v2022_v22 = vld [vmem:[%s2430_s3 + $0x8] sm:$0xff]  ;;  %v28_v50 = vld [vmem:[%s2428_s0 + $0x10] sm:$0xff] }
   0x5   :  { %267 = vmatpush1.msra.mxu1 %v1989_v16  ;;  %465 = vmatpush1.msra.mxu0 %v1989_v16  ;;  %v2029_v23 = vld [vmem:[%s2430_s3] sm:$0xff]  ;;  %v29_v51 = vld [vmem:[%s2428_s0 + $0x18] sm:$0xff]  ;;  %v2079_v54 = vld [vmem:[%s2432_s5 + $0x30] sm:$0xff] }
   0x6   :  { %268 = vmatprep.subr.mxu1 %v1994_v17  ;;  %466 = vmatprep.subr.mxu0 %v1994_v17  ;;  %v2047_v30 = vld [vmem:[%s2431_s4] ss:$0 sm:$0xff]  ;;  %v2074_v53 = vld [vmem:[%s2432_s5 + $0x38] sm:$0xff]  ;;  %v2084_v55 = vld [vmem:[%s2432_s5 + $0x28] sm:$0xff] }
   0x7   :  { %269 = vmatpush1.msra.mxu1 %v2001_v19  ;;  %467 = vmatpush1.msra.mxu0 %v2001_v19  ;;  %v30_v52 = vld [vmem:[%s2428_s0 + $0x20] sm:$0xff]  ;;  %v31_v56 = vld [vmem:[%s2428_s0 + $0x28] sm:$0xff]  ;;  %v32_v58 = vld [vmem:[%s2428_s0 + $0x30] sm:$0xff] }
   0x8   :  { %270 = vmatprep.subr.mxu1 %v2008_v20  ;;  %468 = vmatprep.subr.mxu0 %v2008_v20  ;;  %v2094_v57 = vld [vmem:[%s2432_s5 + $0x20] sm:$0xff]  ;;  %v2103_v59 = vld [vmem:[%s2432_s5 + $0x18] sm:$0xff]  ;;  %v2109_v60 = vld [vmem:[%s2432_s5 + $0x10] sm:$0xff] }
   0x9   :  { %271 = vmatpush1.msra.mxu1 %v2015_v21  ;;  %469 = vmatpush1.msra.mxu0 %v2015_v21  ;;  %v33_v61 = vld [vmem:[%s2428_s0 + $0x38] sm:$0xff]  ;;  %v2126_v0 = vld [vmem:[%s2432_s5 + $0x8] sm:$0xff]  ;;  %v2132_v1 = vld [vmem:[%s2432_s5] sm:$0xff] }
   0xa   :  { %272 = vmatprep.subr.mxu1 %v2022_v22  ;;  %470 = vmatprep.subr.mxu0 %v2022_v22 }
   0xb   :  { %273 = vmatpush1.msra.mxu1 %v2029_v23  ;;  %471 = vmatpush1.msra.mxu0 %v2029_v23 }
   0xc   :  { %662 = vmatprep.subr.mxu0 %v1984_v15  ;;  %1843 = vmatprep.mubr.msk.f32.mxu0 %vm42_vm1, %v28_v50 }
   0xd   :  { %1844 = vmatmul.mubr.msk.f32.gmra.mxu0 %vm42_vm1, %v29_v51  ;;  %364 = vmatprep.subr.mxu1 %v2074_v53 }
   0xe   :  { %1846 = vmatprep.mubr.msk.f32.mxu0 %vm42_vm1, %v30_v52 }
  0x11   :  { %1847 = vmatmul.mubr.msk.f32.gmra.mxu0 %vm42_vm1, %v31_v56 }
  0x12   :  { %1849 = vmatprep.mubr.msk.f32.mxu0 %vm42_vm1, %v32_v58 }
  0x15   :  { %1850 = vmatmul.mubr.msk.f32.gmra.mxu0 %vm42_vm1, %v33_v61 }
  0x16   :  { %504 = vmatprep.mubr.f32.mxu0 %v1921_v18 }
  0xc4   :  { %v1842_v3 = vpop.f32.mrf.mxu0 }
  0xc5   :  { %v143_v28 = vadd.f32 %v1842_v3, %v1976_v4 }
  0xc6   :  { %v137_v5 = vpop.f32.mrf.mxu0 }
  0xc7   :  { %v138_v6 = vadd.f32 %v1976_v4, %v137_v5 }
  0xc9   :  { %1855 = vtanh.f32 %v138_v6 }
  0xd6   :  { %v1856_v7 = vpop.eup %1855 }
  0xd7   :  { %221 = vrot.lane.b32.xlu0 %v1856_v7, %s1919_s1  ;;  %v217_v8 = vadd.f32 1.0, %v1856_v7 }
  0xd9   :  { %v218_v9 = vmul.f32 0.5, %v217_v8 }
  0xdb   :  { %v219_v12 = vmul.f32 0.0, %v218_v9 }
 0x149   :  { %v222_v10 = vpop.permute.xlu0 %221 }
 0x14a   :  { %v224_v11 = vmul.f32 %v222_v10, %v218_v9 }
 0x14c   :  { %226 = vrot.lane.b32.xlu0 %v224_v11, %s1920_s9 }
 0x1be   :  { %v227_v13 = vpop.permute.xlu0 %226 }
 0x1bf   :  { %v229_v14 = vadd.f32 %v227_v13, %v219_v12 }
 0x1c1   :  { %1857 = vtanh.f32 %v229_v14 }
 0x1ce   :  { %v1858_v24 = vpop.eup %1857 }
 0x1cf   :  { %232 = vrot.lane.b32.xlu1 %v1858_v24, %s1919_s1 }
 0x241   :  { %v233_v25 = vpop.permute.xlu1 %232 }
 0x242   :  { %v235_v26 = vmul.f32 %v233_v25, %v218_v9  ;;  %v2158_v9 = vpop.f32.mrf.mxu0 }
 0x244   :  { %237 = vrot.lane.b32.xlu1 %v235_v26, %s1920_s9  ;;  %v147_v10 = vpop.f32.mrf.mxu0 }
 0x245   :  { %v148_v24 = vadd.f32 %v1976_v4, %v147_v10 }
 0x246   :  { %v2160_v11 = vpop.f32.mrf.mxu0 }
 0x248   :  { %v2162_v12 = vpop.f32.mrf.mxu0 }
 0x24a   :  { %v2164_v13 = vpop.f32.mrf.mxu0 }
 0x2b6   :  { %v238_v27 = vpop.permute.xlu1 %237 }
 0x2b7   :  { %1813 = vmatmul.mubr.msk.f32.vlgmr.msra.gmra.mxu1 %vm239_vm2, %v238_v27 }
 0x2b8   :  { %404 = vmatprep.mubr.f32.mxu1 %v1921_v18  ;;  %365 = vmatpush1.msra.mxu1 %v2079_v54 }
 0x2b9   :  { %366 = vmatprep.subr.mxu1 %v2084_v55 }
 0x2ba   :  { %367 = vmatpush1.msra.mxu1 %v2094_v57 }
 0x2bb   :  { %368 = vmatprep.subr.mxu1 %v2103_v59 }
 0x2bc   :  { %369 = vmatpush1.msra.mxu1 %v2109_v60 }
 0x2bd   :  { %370 = vmatprep.subr.mxu1 %v2126_v0 }
 0x2be   :  { %371 = vmatpush1.msra.mxu1 %v2132_v1 }
 0x2bf   :  { %562 = vmatprep.subr.mxu1 %v2074_v53 }
 0x377   :  { %v308_v29 = vpop.f32.mrf.mxu1 }
 0x378   :  { %v414_v31 = vadd.f32 %v308_v29, %v143_v28  ;;  %v2172_v29 = vld [vmem:[%s2433_s6] ss:$0 sm:$0xff] }
 0x379   :  { %v310_v32 = vpop.f32.mrf.mxu1 }
 0x37a   :  { %1859 = vtanh.f32 %v414_v31  ;;  %v313_v33 = vadd.f32 %v2047_v30, %v310_v32 }
 0x37c   :  { %1861 = vtanh.f32 %v313_v33 }
 0x387   :  { %v1860_v34 = vpop.eup %1859 }
 0x388   :  { %420 = vrot.lane.b32.xlu0 %v1860_v34, %s1919_s1  ;;  %v416_v36 = vadd.f32 1.0, %v1860_v34 }
 0x389   :  { %v1862_v35 = vpop.eup %1861 }
 0x38a   :  { %320 = vrot.lane.b32.xlu1 %v1862_v35, %s1919_s1  ;;  %v316_v37 = vadd.f32 1.0, %v1862_v35  ;;  %v417_v38 = vmul.f32 0.5, %v416_v36 }
 0x38c   :  { %v317_v41 = vmul.f32 0.5, %v316_v37  ;;  %v418_v44 = vmul.f32 %v417_v38, %v229_v14  ;;  %v2166_v14 = vpop.f32.mrf.mxu0 }
 0x38e   :  { %v318_v47 = vmul.f32 0.0, %v317_v41 }
 0x3fa   :  { %v421_v39 = vpop.permute.xlu0 %420 }
 0x3fb   :  { %v423_v40 = vmul.f32 %v421_v39, %v417_v38 }
 0x3fc   :  { %v321_v42 = vpop.permute.xlu1 %320 }
 0x3fd   :  { %v323_v43 = vmul.f32 %v321_v42, %v317_v41  ;;  %425 = vrot.lane.b32.xlu0 %v423_v40, %s1920_s9 }
 0x3ff   :  { %325 = vrot.lane.b32.xlu1 %v323_v43, %s1920_s9 }
 0x46f   :  { %v426_v45 = vpop.permute.xlu0 %425 }
 0x470   :  { %v2054_v46 = vadd.f32 %v426_v45, %v418_v44 }
 0x471   :  { %v326_v48 = vpop.permute.xlu1 %325 }
 0x472   :  { %1863 = vtanh.f32 %v2054_v46  ;;  %v2057_v49 = vadd.f32 %v326_v48, %v318_v47 }
 0x474   :  { %1865 = vtanh.f32 %v2057_v49 }
 0x47f   :  { %v1864_v62 = vpop.eup %1863 }
 0x480   :  { %431 = vrot.lane.b32.xlu0 %v1864_v62, %s1919_s1 }
 0x481   :  { %v1866_v63 = vpop.eup %1865 }
 0x482   :  { %331 = vrot.lane.b32.xlu1 %v1866_v63, %s1919_s1 }
 0x4f2   :  { %v432_v2 = vpop.permute.xlu0 %431 }
 0x4f3   :  { %v434_v3 = vmul.f32 %v432_v2, %v417_v38 }
 0x4f4   :  { %v332_v5 = vpop.permute.xlu1 %331 }
 0x4f5   :  { %v334_v6 = vmul.f32 %v332_v5, %v317_v41  ;;  %436 = vrot.lane.b32.xlu0 %v434_v3, %s1920_s9  ;;  %v153_v3 = vadd.f32 %v2158_v9, %v1976_v4 }
 0x4f7   :  { %336 = vrot.lane.b32.xlu1 %v334_v6, %s1920_s9 }
 0x567   :  { %v437_v7 = vpop.permute.xlu0 %436 }
 0x568   :  { %1815 = vmatmul.mubr.msk.f32.vlgmr.msra.gmra.mxu0 %vm239_vm2, %v437_v7 }
 0x569   :  { %v337_v8 = vpop.permute.xlu1 %336  ;;  %663 = vmatpush1.msra.mxu0 %v1989_v16  ;;  %702 = vmatprep.mubr.f32.mxu0 %v1921_v18 }
 0x56a   :  { %1814 = vmatmul.mubr.msk.f32.vlgmr.msra.gmra.mxu1 %vm239_vm2, %v337_v8  ;;  %664 = vmatprep.subr.mxu0 %v1994_v17 }
 0x56b   :  { %665 = vmatpush1.msra.mxu0 %v2001_v19  ;;  %563 = vmatpush1.msra.mxu1 %v2079_v54 }
 0x56c   :  { %666 = vmatprep.subr.mxu0 %v2008_v20  ;;  %564 = vmatprep.subr.mxu1 %v2084_v55 }
 0x56d   :  { %667 = vmatpush1.msra.mxu0 %v2015_v21  ;;  %565 = vmatpush1.msra.mxu1 %v2094_v57 }
 0x56e   :  { %668 = vmatprep.subr.mxu0 %v2022_v22  ;;  %566 = vmatprep.subr.mxu1 %v2103_v59 }
 0x56f   :  { %669 = vmatpush1.msra.mxu0 %v2029_v23  ;;  %567 = vmatpush1.msra.mxu1 %v2109_v60 }
 0x570   :  { %568 = vmatprep.subr.mxu1 %v2126_v0  ;;  %602 = vmatprep.mubr.f32.mxu1 %v1921_v18 }
 0x571   :  { %569 = vmatpush1.msra.mxu1 %v2132_v1  ;;  %860 = vmatprep.subr.mxu0 %v1984_v15 }
 0x572   :  { %760 = vmatprep.subr.mxu1 %v2074_v53 }
 0x628   :  { %v506_v25 = vpop.f32.mrf.mxu0 }
 0x629   :  { %v612_v26 = vadd.f32 %v506_v25, %v148_v24 }
 0x62a   :  { %v406_v27 = vpop.f32.mrf.mxu1  ;;  %v508_v28 = vpop.f32.mrf.mxu0 }
 0x62b   :  { %1867 = vtanh.f32 %v612_v26  ;;  %v511_v31 = vadd.f32 %v2047_v30, %v508_v28 }
 0x62c   :  { %v408_v32 = vpop.f32.mrf.mxu1 }
 0x62d   :  { %v512_v33 = vadd.f32 %v511_v31, %v406_v27  ;;  %v411_v34 = vadd.f32 %v2172_v29, %v408_v32 }
 0x62f   :  { %1869 = vtanh.f32 %v512_v33  ;;  %412 = vst [vmem:[%s2434_s7] sm:$0xff] %v411_v34 }
 0x638   :  { %v1868_v35 = vpop.eup %1867 }
 0x639   :  { %618 = vrot.lane.b32.xlu0 %v1868_v35, %s1919_s1  ;;  %v614_v37 = vadd.f32 1.0, %v1868_v35 }
 0x63b   :  { %v615_v38 = vmul.f32 0.5, %v614_v37 }
 0x63c   :  { %v1870_v36 = vpop.eup %1869 }
 0x63d   :  { %518 = vrot.lane.b32.xlu1 %v1870_v36, %s1919_s1  ;;  %v514_v39 = vadd.f32 1.0, %v1870_v36  ;;  %v616_v45 = vmul.f32 %v615_v38, %v2054_v46 }
 0x63f   :  { %v515_v42 = vmul.f32 0.5, %v514_v39 }
 0x641   :  { %v516_v50 = vmul.f32 %v515_v42, %v2057_v49 }
 0x6ab   :  { %v619_v40 = vpop.permute.xlu0 %618 }
 0x6ac   :  { %v621_v41 = vmul.f32 %v619_v40, %v615_v38 }
 0x6ae   :  { %623 = vrot.lane.b32.xlu0 %v621_v41, %s1920_s9 }
 0x6af   :  { %v519_v43 = vpop.permute.xlu1 %518 }
 0x6b0   :  { %v521_v44 = vmul.f32 %v519_v43, %v515_v42 }
 0x6b2   :  { %523 = vrot.lane.b32.xlu1 %v521_v44, %s1920_s9 }
 0x720   :  { %v624_v47 = vpop.permute.xlu0 %623 }
 0x721   :  { %v2184_v48 = vadd.f32 %v624_v47, %v616_v45 }
 0x723   :  { %1871 = vtanh.f32 %v2184_v48 }
 0x724   :  { %v524_v51 = vpop.permute.xlu1 %523 }
 0x725   :  { %v2188_v52 = vadd.f32 %v524_v51, %v516_v50 }
 0x727   :  { %1873 = vtanh.f32 %v2188_v52 }
 0x730   :  { %v1872_v56 = vpop.eup %1871 }
 0x731   :  { %629 = vrot.lane.b32.xlu0 %v1872_v56, %s1919_s1 }
 0x734   :  { %v1874_v58 = vpop.eup %1873 }
 0x735   :  { %529 = vrot.lane.b32.xlu1 %v1874_v58, %s1919_s1  ;;  %v158_v58 = vadd.f32 %v1976_v4, %v2162_v12 }
 0x7a3   :  { %v630_v61 = vpop.permute.xlu0 %629 }
 0x7a4   :  { %v632_v46 = vmul.f32 %v630_v61, %v615_v38 }
 0x7a6   :  { %634 = vrot.lane.b32.xlu0 %v632_v46, %s1920_s9 }
 0x7a7   :  { %v530_v62 = vpop.permute.xlu1 %529 }
 0x7a8   :  { %v532_v63 = vmul.f32 %v530_v62, %v515_v42 }
 0x7aa   :  { %534 = vrot.lane.b32.xlu1 %v532_v63, %s1920_s9 }
 0x818   :  { %v635_v49 = vpop.permute.xlu0 %634 }
 0x819   :  { %1817 = vmatmul.mubr.msk.f32.vlgmr.msra.gmra.mxu0 %vm239_vm2, %v635_v49 }
 0x81a   :  { %861 = vmatpush1.msra.mxu0 %v1989_v16  ;;  %900 = vmatprep.mubr.f32.mxu0 %v1921_v18 }
 0x81b   :  { %862 = vmatprep.subr.mxu0 %v1994_v17 }
 0x81c   :  { %v535_v2 = vpop.permute.xlu1 %534  ;;  %863 = vmatpush1.msra.mxu0 %v2001_v19 }
 0x81d   :  { %1816 = vmatmul.mubr.msk.f32.vlgmr.msra.gmra.mxu1 %vm239_vm2, %v535_v2  ;;  %864 = vmatprep.subr.mxu0 %v2008_v20 }
 0x81e   :  { %761 = vmatpush1.msra.mxu1 %v2079_v54  ;;  %865 = vmatpush1.msra.mxu0 %v2015_v21 }
 0x81f   :  { %762 = vmatprep.subr.mxu1 %v2084_v55  ;;  %866 = vmatprep.subr.mxu0 %v2022_v22 }
 0x820   :  { %867 = vmatpush1.msra.mxu0 %v2029_v23  ;;  %763 = vmatpush1.msra.mxu1 %v2094_v57 }
 0x821   :  { %764 = vmatprep.subr.mxu1 %v2103_v59  ;;  %800 = vmatprep.mubr.f32.mxu1 %v1921_v18 }
 0x822   :  { %765 = vmatpush1.msra.mxu1 %v2109_v60  ;;  %1058 = vmatprep.subr.mxu0 %v1984_v15 }
 0x823   :  { %766 = vmatprep.subr.mxu1 %v2126_v0 }
 0x824   :  { %767 = vmatpush1.msra.mxu1 %v2132_v1 }
 0x825   :  { %958 = vmatprep.subr.mxu1 %v2074_v53 }
 0x8d9   :  { %v704_v5 = vpop.f32.mrf.mxu0 }
 0x8da   :  { %v810_v6 = vadd.f32 %v704_v5, %v153_v3 }
 0x8db   :  { %v706_v7 = vpop.f32.mrf.mxu0 }
 0x8dc   :  { %1875 = vtanh.f32 %v810_v6  ;;  %v709_v8 = vadd.f32 %v2047_v30, %v706_v7 }
 0x8dd   :  { %v604_v10 = vpop.f32.mrf.mxu1 }
 0x8de   :  { %v710_v24 = vadd.f32 %v709_v8, %v604_v10 }
 0x8df   :  { %v606_v25 = vpop.f32.mrf.mxu1 }
 0x8e0   :  { %1877 = vtanh.f32 %v710_v24  ;;  %v609_v26 = vadd.f32 %v2172_v29, %v606_v25 }
 0x8e2   :  { %610 = vst [vmem:[%s2434_s7 + $0x8] sm:$0xff] %v609_v26 }
 0x8e9   :  { %v1876_v27 = vpop.eup %1875 }
 0x8ea   :  { %816 = vrot.lane.b32.xlu0 %v1876_v27, %s1919_s1  ;;  %v812_v28 = vadd.f32 1.0, %v1876_v27 }
 0x8ec   :  { %v813_v31 = vmul.f32 0.5, %v812_v28 }
 0x8ed   :  { %v1878_v9 = vpop.eup %1877 }
 0x8ee   :  { %716 = vrot.lane.b32.xlu1 %v1878_v9, %s1919_s1  ;;  %v712_v32 = vadd.f32 1.0, %v1878_v9  ;;  %v814_v38 = vmul.f32 %v813_v31, %v2184_v48 }
 0x8f0   :  { %v713_v35 = vmul.f32 0.5, %v712_v32 }
 0x8f2   :  { %v714_v41 = vmul.f32 %v713_v35, %v2188_v52 }
 0x95c   :  { %v817_v33 = vpop.permute.xlu0 %816 }
 0x95d   :  { %v819_v34 = vmul.f32 %v817_v33, %v813_v31 }
 0x95f   :  { %821 = vrot.lane.b32.xlu0 %v819_v34, %s1920_s9 }
 0x960   :  { %v717_v36 = vpop.permute.xlu1 %716 }
 0x961   :  { %v719_v37 = vmul.f32 %v717_v36, %v713_v35 }
 0x963   :  { %721 = vrot.lane.b32.xlu1 %v719_v37, %s1920_s9 }
 0x9d1   :  { %v822_v39 = vpop.permute.xlu0 %821 }
 0x9d2   :  { %v2227_v40 = vadd.f32 %v822_v39, %v814_v38 }
 0x9d4   :  { %1879 = vtanh.f32 %v2227_v40 }
 0x9d5   :  { %v722_v42 = vpop.permute.xlu1 %721 }
 0x9d6   :  { %v2231_v43 = vadd.f32 %v722_v42, %v714_v41 }
 0x9d8   :  { %1881 = vtanh.f32 %v2231_v43 }
 0x9e1   :  { %v1880_v44 = vpop.eup %1879 }
 0x9e2   :  { %827 = vrot.lane.b32.xlu0 %v1880_v44, %s1919_s1  ;;  %v163_v44 = vadd.f32 %v2160_v11, %v1976_v4 }
 0x9e5   :  { %v1882_v45 = vpop.eup %1881 }
 0x9e6   :  { %727 = vrot.lane.b32.xlu1 %v1882_v45, %s1919_s1 }
 0xa54   :  { %v828_v47 = vpop.permute.xlu0 %827 }
 0xa55   :  { %v830_v48 = vmul.f32 %v828_v47, %v813_v31 }
 0xa57   :  { %832 = vrot.lane.b32.xlu0 %v830_v48, %s1920_s9 }
 0xa58   :  { %v728_v50 = vpop.permute.xlu1 %727 }
 0xa59   :  { %v730_v51 = vmul.f32 %v728_v50, %v713_v35 }
 0xa5b   :  { %732 = vrot.lane.b32.xlu1 %v730_v51, %s1920_s9 }
 0xac9   :  { %v833_v52 = vpop.permute.xlu0 %832 }
 0xaca   :  { %1819 = vmatmul.mubr.msk.f32.vlgmr.msra.gmra.mxu0 %vm239_vm2, %v833_v52 }
 0xacb   :  { %1059 = vmatpush1.msra.mxu0 %v1989_v16  ;;  %1098 = vmatprep.mubr.f32.mxu0 %v1921_v18 }
 0xacc   :  { %1060 = vmatprep.subr.mxu0 %v1994_v17 }
 0xacd   :  { %v733_v56 = vpop.permute.xlu1 %732  ;;  %1061 = vmatpush1.msra.mxu0 %v2001_v19 }
 0xace   :  { %1818 = vmatmul.mubr.msk.f32.vlgmr.msra.gmra.mxu1 %vm239_vm2, %v733_v56  ;;  %1062 = vmatprep.subr.mxu0 %v2008_v20 }
 0xacf   :  { %959 = vmatpush1.msra.mxu1 %v2079_v54  ;;  %1063 = vmatpush1.msra.mxu0 %v2015_v21 }
 0xad0   :  { %960 = vmatprep.subr.mxu1 %v2084_v55  ;;  %1064 = vmatprep.subr.mxu0 %v2022_v22 }
 0xad1   :  { %1065 = vmatpush1.msra.mxu0 %v2029_v23  ;;  %961 = vmatpush1.msra.mxu1 %v2094_v57 }
 0xad2   :  { %962 = vmatprep.subr.mxu1 %v2103_v59  ;;  %998 = vmatprep.mubr.f32.mxu1 %v1921_v18 }
 0xad3   :  { %963 = vmatpush1.msra.mxu1 %v2109_v60  ;;  %1256 = vmatprep.subr.mxu0 %v1984_v15 }
 0xad4   :  { %964 = vmatprep.subr.mxu1 %v2126_v0 }
 0xad5   :  { %965 = vmatpush1.msra.mxu1 %v2132_v1 }
 0xad6   :  { %1156 = vmatprep.subr.mxu1 %v2074_v53 }
 0xb8a   :  { %v902_v61 = vpop.f32.mrf.mxu0 }
 0xb8b   :  { %v1008_v46 = vadd.f32 %v902_v61, %v158_v58 }
 0xb8c   :  { %v904_v62 = vpop.f32.mrf.mxu0 }
 0xb8d   :  { %1883 = vtanh.f32 %v1008_v46  ;;  %v907_v63 = vadd.f32 %v2047_v30, %v904_v62 }
 0xb8e   :  { %v802_v49 = vpop.f32.mrf.mxu1 }
 0xb8f   :  { %v908_v2 = vadd.f32 %v907_v63, %v802_v49 }
 0xb90   :  { %v804_v3 = vpop.f32.mrf.mxu1 }
 0xb91   :  { %1885 = vtanh.f32 %v908_v2  ;;  %v807_v5 = vadd.f32 %v2172_v29, %v804_v3 }
 0xb93   :  { %808 = vst [vmem:[%s2434_s7 + $0x10] sm:$0xff] %v807_v5 }
 0xb9a   :  { %v1884_v6 = vpop.eup %1883 }
 0xb9b   :  { %1014 = vrot.lane.b32.xlu0 %v1884_v6, %s1919_s1  ;;  %v1010_v7 = vadd.f32 1.0, %v1884_v6 }
 0xb9d   :  { %v1011_v8 = vmul.f32 0.5, %v1010_v7 }
 0xb9e   :  { %v1886_v12 = vpop.eup %1885 }
 0xb9f   :  { %914 = vrot.lane.b32.xlu1 %v1886_v12, %s1919_s1  ;;  %v910_v10 = vadd.f32 1.0, %v1886_v12  ;;  %v1012_v28 = vmul.f32 %v1011_v8, %v2227_v40 }
 0xba1   :  { %v911_v26 = vmul.f32 0.5, %v910_v10 }
 0xba3   :  { %v912_v33 = vmul.f32 %v911_v26, %v2231_v43 }
 0xc0d   :  { %v1015_v24 = vpop.permute.xlu0 %1014 }
 0xc0e   :  { %v1017_v25 = vmul.f32 %v1015_v24, %v1011_v8 }
 0xc10   :  { %1019 = vrot.lane.b32.xlu0 %v1017_v25, %s1920_s9 }
 0xc11   :  { %v915_v27 = vpop.permute.xlu1 %914 }
 0xc12   :  { %v917_v9 = vmul.f32 %v915_v27, %v911_v26 }
 0xc14   :  { %919 = vrot.lane.b32.xlu1 %v917_v9, %s1920_s9 }
 0xc82   :  { %v1020_v31 = vpop.permute.xlu0 %1019 }
 0xc83   :  { %v2270_v32 = vadd.f32 %v1020_v31, %v1012_v28 }
 0xc85   :  { %1887 = vtanh.f32 %v2270_v32 }
 0xc86   :  { %v920_v34 = vpop.permute.xlu1 %919 }
 0xc87   :  { %v2274_v35 = vadd.f32 %v920_v34, %v912_v33 }
 0xc89   :  { %1889 = vtanh.f32 %v2274_v35 }
 0xc92   :  { %v1888_v36 = vpop.eup %1887 }
 0xc93   :  { %1025 = vrot.lane.b32.xlu0 %v1888_v36, %s1919_s1 }
 0xc96   :  { %v1890_v37 = vpop.eup %1889 }
 0xc97   :  { %925 = vrot.lane.b32.xlu1 %v1890_v37, %s1919_s1 }
 0xd05   :  { %v1026_v38 = vpop.permute.xlu0 %1025 }
 0xd06   :  { %v1028_v39 = vmul.f32 %v1026_v38, %v1011_v8 }
 0xd08   :  { %1030 = vrot.lane.b32.xlu0 %v1028_v39, %s1920_s9 }
 0xd09   :  { %v926_v40 = vpop.permute.xlu1 %925 }
 0xd0a   :  { %v928_v41 = vmul.f32 %v926_v40, %v911_v26 }
 0xd0c   :  { %930 = vrot.lane.b32.xlu1 %v928_v41, %s1920_s9 }
 0xd7a   :  { %v1031_v42 = vpop.permute.xlu0 %1030 }
 0xd7b   :  { %1821 = vmatmul.mubr.msk.f32.vlgmr.msra.gmra.mxu0 %vm239_vm2, %v1031_v42 }
 0xd7c   :  { %1257 = vmatpush1.msra.mxu0 %v1989_v16  ;;  %1296 = vmatprep.mubr.f32.mxu0 %v1921_v18 }
 0xd7d   :  { %1258 = vmatprep.subr.mxu0 %v1994_v17 }
 0xd7e   :  { %v931_v43 = vpop.permute.xlu1 %930  ;;  %1259 = vmatpush1.msra.mxu0 %v2001_v19 }
 0xd7f   :  { %1820 = vmatmul.mubr.msk.f32.vlgmr.msra.gmra.mxu1 %vm239_vm2, %v931_v43  ;;  %1260 = vmatprep.subr.mxu0 %v2008_v20 }
 0xd80   :  { %1157 = vmatpush1.msra.mxu1 %v2079_v54  ;;  %1261 = vmatpush1.msra.mxu0 %v2015_v21 }
 0xd81   :  { %1158 = vmatprep.subr.mxu1 %v2084_v55  ;;  %1262 = vmatprep.subr.mxu0 %v2022_v22 }
 0xd82   :  { %1263 = vmatpush1.msra.mxu0 %v2029_v23  ;;  %1159 = vmatpush1.msra.mxu1 %v2094_v57 }
 0xd83   :  { %1160 = vmatprep.subr.mxu1 %v2103_v59  ;;  %1196 = vmatprep.mubr.f32.mxu1 %v1921_v18 }
 0xd84   :  { %1161 = vmatpush1.msra.mxu1 %v2109_v60  ;;  %1454 = vmatprep.subr.mxu0 %v1984_v15 }
 0xd85   :  { %1162 = vmatprep.subr.mxu1 %v2126_v0 }
 0xd86   :  { %1163 = vmatpush1.msra.mxu1 %v2132_v1 }
 0xd87   :  { %1354 = vmatprep.subr.mxu1 %v2074_v53 }
 0xe3b   :  { %v1100_v45 = vpop.f32.mrf.mxu0 }
 0xe3c   :  { %v1206_v47 = vadd.f32 %v1100_v45, %v163_v44 }
 0xe3d   :  { %v1102_v48 = vpop.f32.mrf.mxu0 }
 0xe3e   :  { %1891 = vtanh.f32 %v1206_v47  ;;  %v1105_v50 = vadd.f32 %v2047_v30, %v1102_v48 }
 0xe3f   :  { %v1000_v51 = vpop.f32.mrf.mxu1 }
 0xe40   :  { %v1106_v52 = vadd.f32 %v1105_v50, %v1000_v51 }
 0xe41   :  { %v1002_v56 = vpop.f32.mrf.mxu1 }
 0xe42   :  { %1893 = vtanh.f32 %v1106_v52  ;;  %v1005_v58 = vadd.f32 %v2172_v29, %v1002_v56 }
 0xe44   :  { %1006 = vst [vmem:[%s2434_s7 + $0x18] sm:$0xff] %v1005_v58 }
 0xe4b   :  { %v1892_v61 = vpop.eup %1891 }
 0xe4c   :  { %1212 = vrot.lane.b32.xlu0 %v1892_v61, %s1919_s1  ;;  %v1208_v46 = vadd.f32 1.0, %v1892_v61 }
 0xe4e   :  { %v1209_v62 = vmul.f32 0.5, %v1208_v46 }
 0xe4f   :  { %v1894_v11 = vpop.eup %1893 }
 0xe50   :  { %1112 = vrot.lane.b32.xlu1 %v1894_v11, %s1919_s1  ;;  %v1108_v63 = vadd.f32 1.0, %v1894_v11  ;;  %v1210_v12 = vmul.f32 %v1209_v62, %v2270_v32 }
 0xe52   :  { %v1109_v3 = vmul.f32 0.5, %v1108_v63 }
 0xe54   :  { %v1110_v10 = vmul.f32 %v1109_v3, %v2274_v35  ;;  %v168_v35 = vadd.f32 %v1976_v4, %v2166_v14 }
 0xebe   :  { %v1213_v49 = vpop.permute.xlu0 %1212 }
 0xebf   :  { %v1215_v2 = vmul.f32 %v1213_v49, %v1209_v62 }
 0xec1   :  { %1217 = vrot.lane.b32.xlu0 %v1215_v2, %s1920_s9 }
 0xec2   :  { %v1113_v5 = vpop.permute.xlu1 %1112 }
 0xec3   :  { %v1115_v6 = vmul.f32 %v1113_v5, %v1109_v3 }
 0xec5   :  { %1117 = vrot.lane.b32.xlu1 %v1115_v6, %s1920_s9 }
 0xf33   :  { %v1218_v7 = vpop.permute.xlu0 %1217 }
 0xf34   :  { %v2313_v8 = vadd.f32 %v1218_v7, %v1210_v12 }
 0xf36   :  { %1895 = vtanh.f32 %v2313_v8 }
 0xf37   :  { %v1118_v24 = vpop.permute.xlu1 %1117 }
 0xf38   :  { %v2317_v25 = vadd.f32 %v1118_v24, %v1110_v10 }
 0xf3a   :  { %1897 = vtanh.f32 %v2317_v25 }
 0xf43   :  { %v1896_v26 = vpop.eup %1895 }
 0xf44   :  { %1223 = vrot.lane.b32.xlu0 %v1896_v26, %s1919_s1 }
 0xf47   :  { %v1898_v27 = vpop.eup %1897 }
 0xf48   :  { %1123 = vrot.lane.b32.xlu1 %v1898_v27, %s1919_s1 }
 0xfb6   :  { %v1224_v9 = vpop.permute.xlu0 %1223 }
 0xfb7   :  { %v1226_v28 = vmul.f32 %v1224_v9, %v1209_v62 }
 0xfb9   :  { %1228 = vrot.lane.b32.xlu0 %v1226_v28, %s1920_s9 }
 0xfba   :  { %v1124_v31 = vpop.permute.xlu1 %1123 }
 0xfbb   :  { %v1126_v32 = vmul.f32 %v1124_v31, %v1109_v3 }
 0xfbd   :  { %1128 = vrot.lane.b32.xlu1 %v1126_v32, %s1920_s9 }
0x102b   :  { %v1229_v33 = vpop.permute.xlu0 %1228 }
0x102c   :  { %1823 = vmatmul.mubr.msk.f32.vlgmr.msra.gmra.mxu0 %vm239_vm2, %v1229_v33 }
0x102d   :  { %1455 = vmatpush1.msra.mxu0 %v1989_v16  ;;  %1494 = vmatprep.mubr.f32.mxu0 %v1921_v18 }
0x102e   :  { %1456 = vmatprep.subr.mxu0 %v1994_v17 }
0x102f   :  { %v1129_v34 = vpop.permute.xlu1 %1128  ;;  %1457 = vmatpush1.msra.mxu0 %v2001_v19 }
0x1030   :  { %1822 = vmatmul.mubr.msk.f32.vlgmr.msra.gmra.mxu1 %vm239_vm2, %v1129_v34  ;;  %1458 = vmatprep.subr.mxu0 %v2008_v20 }
0x1031   :  { %1355 = vmatpush1.msra.mxu1 %v2079_v54  ;;  %1459 = vmatpush1.msra.mxu0 %v2015_v21 }
0x1032   :  { %1356 = vmatprep.subr.mxu1 %v2084_v55  ;;  %1460 = vmatprep.subr.mxu0 %v2022_v22 }
0x1033   :  { %1461 = vmatpush1.msra.mxu0 %v2029_v23  ;;  %1357 = vmatpush1.msra.mxu1 %v2094_v57 }
0x1034   :  { %1358 = vmatprep.subr.mxu1 %v2103_v59  ;;  %1394 = vmatprep.mubr.f32.mxu1 %v1921_v18 }
0x1035   :  { %1359 = vmatpush1.msra.mxu1 %v2109_v60  ;;  %1652 = vmatprep.subr.mxu0 %v1984_v15 }
0x1036   :  { %1360 = vmatprep.subr.mxu1 %v2126_v0 }
0x1037   :  { %1361 = vmatpush1.msra.mxu1 %v2132_v1 }
0x1038   :  { %1552 = vmatprep.subr.mxu1 %v2074_v53 }
0x10ec   :  { %v1298_v36 = vpop.f32.mrf.mxu0 }
0x10ed   :  { %v1404_v37 = vadd.f32 %v1298_v36, %v168_v35 }
0x10ee   :  { %v1300_v38 = vpop.f32.mrf.mxu0 }
0x10ef   :  { %1899 = vtanh.f32 %v1404_v37  ;;  %v1303_v39 = vadd.f32 %v2047_v30, %v1300_v38 }
0x10f0   :  { %v1198_v40 = vpop.f32.mrf.mxu1 }
0x10f1   :  { %v1304_v41 = vadd.f32 %v1303_v39, %v1198_v40 }
0x10f2   :  { %v1200_v42 = vpop.f32.mrf.mxu1 }
0x10f3   :  { %1901 = vtanh.f32 %v1304_v41  ;;  %v1203_v15 = vadd.f32 %v2172_v29, %v1200_v42 }
0x10f5   :  { %1204 = vst [vmem:[%s2434_s7 + $0x20] sm:$0xff] %v1203_v15 }
0x10fc   :  { %v1900_v43 = vpop.eup %1899 }
0x10fd   :  { %1410 = vrot.lane.b32.xlu0 %v1900_v43, %s1919_s1  ;;  %v1406_v44 = vadd.f32 1.0, %v1900_v43 }
0x10ff   :  { %v1407_v45 = vmul.f32 0.5, %v1406_v44 }
0x1100   :  { %v1902_v14 = vpop.eup %1901 }
0x1101   :  { %1310 = vrot.lane.b32.xlu1 %v1902_v14, %s1919_s1  ;;  %v1306_v47 = vadd.f32 1.0, %v1902_v14  ;;  %v1408_v58 = vmul.f32 %v1407_v45, %v2313_v8 }
0x1103   :  { %v1307_v51 = vmul.f32 0.5, %v1306_v47 }
0x1105   :  { %v1308_v46 = vmul.f32 %v1307_v51, %v2317_v25 }
0x116f   :  { %v1411_v48 = vpop.permute.xlu0 %1410 }
0x1170   :  { %v1413_v50 = vmul.f32 %v1411_v48, %v1407_v45 }
0x1172   :  { %1415 = vrot.lane.b32.xlu0 %v1413_v50, %s1920_s9 }
0x1173   :  { %v1311_v52 = vpop.permute.xlu1 %1310 }
0x1174   :  { %v1313_v56 = vmul.f32 %v1311_v52, %v1307_v51 }
0x1176   :  { %1315 = vrot.lane.b32.xlu1 %v1313_v56, %s1920_s9 }
0x11e4   :  { %v1416_v61 = vpop.permute.xlu0 %1415 }
0x11e5   :  { %v2356_v11 = vadd.f32 %v1416_v61, %v1408_v58 }
0x11e7   :  { %1903 = vtanh.f32 %v2356_v11 }
0x11e8   :  { %v1316_v62 = vpop.permute.xlu1 %1315 }
0x11e9   :  { %v2360_v63 = vadd.f32 %v1316_v62, %v1308_v46 }
0x11eb   :  { %1905 = vtanh.f32 %v2360_v63 }
0x11f4   :  { %v1904_v49 = vpop.eup %1903 }
0x11f5   :  { %1421 = vrot.lane.b32.xlu0 %v1904_v49, %s1919_s1 }
0x11f8   :  { %v1906_v2 = vpop.eup %1905 }
0x11f9   :  { %1321 = vrot.lane.b32.xlu1 %v1906_v2, %s1919_s1 }
0x1267   :  { %v1422_v3 = vpop.permute.xlu0 %1421 }
0x1268   :  { %v1424_v5 = vmul.f32 %v1422_v3, %v1407_v45 }
0x126a   :  { %1426 = vrot.lane.b32.xlu0 %v1424_v5, %s1920_s9 }
0x126b   :  { %v1322_v6 = vpop.permute.xlu1 %1321 }
0x126c   :  { %v1324_v12 = vmul.f32 %v1322_v6, %v1307_v51 }
0x126e   :  { %1326 = vrot.lane.b32.xlu1 %v1324_v12, %s1920_s9 }
0x12dc   :  { %v1427_v7 = vpop.permute.xlu0 %1426 }
0x12dd   :  { %1825 = vmatmul.mubr.msk.f32.vlgmr.msra.gmra.mxu0 %vm239_vm2, %v1427_v7 }
0x12de   :  { %1653 = vmatpush1.msra.mxu0 %v1989_v16  ;;  %1692 = vmatprep.mubr.f32.mxu0 %v1921_v18  ;;  %v173_v16 = vadd.f32 %v2164_v13, %v1976_v4 }
0x12df   :  { %1654 = vmatprep.subr.mxu0 %v1994_v17 }
0x12e0   :  { %v1327_v8 = vpop.permute.xlu1 %1326  ;;  %1655 = vmatpush1.msra.mxu0 %v2001_v19 }
0x12e1   :  { %1824 = vmatmul.mubr.msk.f32.vlgmr.msra.gmra.mxu1 %vm239_vm2, %v1327_v8  ;;  %1656 = vmatprep.subr.mxu0 %v2008_v20 }
0x12e2   :  { %1553 = vmatpush1.msra.mxu1 %v2079_v54  ;;  %1657 = vmatpush1.msra.mxu0 %v2015_v21 }
0x12e3   :  { %1554 = vmatprep.subr.mxu1 %v2084_v55  ;;  %1658 = vmatprep.subr.mxu0 %v2022_v22 }
0x12e4   :  { %1659 = vmatpush1.msra.mxu0 %v2029_v23  ;;  %1555 = vmatpush1.msra.mxu1 %v2094_v57 }
0x12e5   :  { %1556 = vmatprep.subr.mxu1 %v2103_v59  ;;  %1592 = vmatprep.mubr.f32.mxu1 %v1921_v18 }
0x12e6   :  { %1557 = vmatpush1.msra.mxu1 %v2109_v60 }
0x12e7   :  { %1558 = vmatprep.subr.mxu1 %v2126_v0 }
0x12e8   :  { %1559 = vmatpush1.msra.mxu1 %v2132_v1 }
0x12e9   :  { %1749 = vmatprep.subr.mxu1 %v2074_v53 }
0x139d   :  { %v1496_v17 = vpop.f32.mrf.mxu0 }
0x139e   :  { %v1602_v19 = vadd.f32 %v1496_v17, %v173_v16 }
0x139f   :  { %v1498_v20 = vpop.f32.mrf.mxu0 }
0x13a0   :  { %1907 = vtanh.f32 %v1602_v19  ;;  %v1501_v21 = vadd.f32 %v2047_v30, %v1498_v20 }
0x13a1   :  { %v1396_v22 = vpop.f32.mrf.mxu1 }
0x13a2   :  { %v1502_v23 = vadd.f32 %v1501_v21, %v1396_v22 }
0x13a3   :  { %v1398_v10 = vpop.f32.mrf.mxu1 }
0x13a4   :  { %1909 = vtanh.f32 %v1502_v23  ;;  %v1401_v24 = vadd.f32 %v2172_v29, %v1398_v10 }
0x13a6   :  { %1402 = vst [vmem:[%s2434_s7 + $0x28] sm:$0xff] %v1401_v24 }
0x13ad   :  { %v1908_v53 = vpop.eup %1907 }
0x13ae   :  { %1608 = vrot.lane.b32.xlu0 %v1908_v53, %s1919_s1  ;;  %v1604_v13 = vadd.f32 1.0, %v1908_v53 }
0x13b0   :  { %v1605_v25 = vmul.f32 0.5, %v1604_v13 }
0x13b1   :  { %v1910_v4 = vpop.eup %1909 }
0x13b2   :  { %1508 = vrot.lane.b32.xlu1 %v1910_v4, %s1919_s1  ;;  %v1504_v26 = vadd.f32 1.0, %v1910_v4  ;;  %v1606_v33 = vmul.f32 %v1605_v25, %v2356_v11 }
0x13b4   :  { %v1505_v28 = vmul.f32 0.5, %v1504_v26 }
0x13b6   :  { %v1506_v36 = vmul.f32 %v1505_v28, %v2360_v63 }
0x1420   :  { %v1609_v27 = vpop.permute.xlu0 %1608 }
0x1421   :  { %v1611_v9 = vmul.f32 %v1609_v27, %v1605_v25 }
0x1423   :  { %1613 = vrot.lane.b32.xlu0 %v1611_v9, %s1920_s9 }
0x1424   :  { %v1509_v31 = vpop.permute.xlu1 %1508 }
0x1425   :  { %v1511_v32 = vmul.f32 %v1509_v31, %v1505_v28 }
0x1427   :  { %1513 = vrot.lane.b32.xlu1 %v1511_v32, %s1920_s9 }
0x1495   :  { %v1614_v34 = vpop.permute.xlu0 %1613 }
0x1496   :  { %v1616_v35 = vadd.f32 %v1614_v34, %v1606_v33 }
0x1498   :  { %1911 = vtanh.f32 %v1616_v35 }
0x1499   :  { %v1514_v37 = vpop.permute.xlu1 %1513 }
0x149a   :  { %v1516_v38 = vadd.f32 %v1514_v37, %v1506_v36 }
0x149c   :  { %1913 = vtanh.f32 %v1516_v38 }
0x14a5   :  { %v1912_v39 = vpop.eup %1911 }
0x14a6   :  { %1619 = vrot.lane.b32.xlu0 %v1912_v39, %s1919_s1 }
0x14a9   :  { %v1914_v40 = vpop.eup %1913 }
0x14aa   :  { %1519 = vrot.lane.b32.xlu1 %v1914_v40, %s1919_s1 }
0x1518   :  { %v1620_v41 = vpop.permute.xlu0 %1619 }
0x1519   :  { %v1622_v42 = vmul.f32 %v1620_v41, %v1605_v25 }
0x151b   :  { %1624 = vrot.lane.b32.xlu0 %v1622_v42, %s1920_s9 }
0x151c   :  { %v1520_v15 = vpop.permute.xlu1 %1519 }
0x151d   :  { %v1522_v43 = vmul.f32 %v1520_v15, %v1505_v28 }
0x151f   :  { %1524 = vrot.lane.b32.xlu1 %v1522_v43, %s1920_s9 }
0x158d   :  { %v1625_v14 = vpop.permute.xlu0 %1624 }
0x158e   :  { %1827 = vmatmul.mubr.msk.f32.vlgmr.msra.gmra.mxu0 %vm239_vm2, %v1625_v14 }
0x1591   :  { %v1525_v44 = vpop.permute.xlu1 %1524 }
0x1592   :  { %1826 = vmatmul.mubr.msk.f32.vlgmr.msra.gmra.mxu1 %vm239_vm2, %v1525_v44 }
0x1593   :  { %1750 = vmatpush1.msra.mxu1 %v2079_v54  ;;  %1789 = vmatprep.mubr.f32.mxu1 %v1921_v18 }
0x1594   :  { %1751 = vmatprep.subr.mxu1 %v2084_v55 }
0x1595   :  { %1752 = vmatpush1.msra.mxu1 %v2094_v57 }
0x1596   :  { %1753 = vmatprep.subr.mxu1 %v2103_v59 }
0x1597   :  { %1754 = vmatpush1.msra.mxu1 %v2109_v60 }
0x1598   :  { %1755 = vmatprep.subr.mxu1 %v2126_v0 }
0x1599   :  { %1756 = vmatpush1.msra.mxu1 %v2132_v1 }
0x164e   :  { %v1694_v45 = vpop.f32.mrf.mxu0 }
0x1650   :  { %v1695_v47 = vpop.f32.mrf.mxu0 }
0x1651   :  { %v1698_v48 = vadd.f32 %v2047_v30, %v1695_v47 }
0x1652   :  { %v1594_v50 = vpop.f32.mrf.mxu1 }
0x1653   :  { %v1699_v54 = vadd.f32 %v1698_v48, %v1594_v50 }
0x1654   :  { %v1596_v51 = vpop.f32.mrf.mxu1 }
0x1655   :  { %1915 = vtanh.f32 %v1699_v54  ;;  %v1599_v18 = vadd.f32 %v2172_v29, %v1596_v51 }
0x1657   :  { %1600 = vst [vmem:[%s2434_s7 + $0x30] sm:$0xff] %v1599_v18 }
0x1662   :  { %v1916_v55 = vpop.eup %1915 }
0x1663   :  { %1705 = vrot.lane.b32.xlu0 %v1916_v55, %s1919_s1  ;;  %v1701_v57 = vadd.f32 1.0, %v1916_v55 }
0x1665   :  { %v1702_v59 = vmul.f32 0.5, %v1701_v57 }
0x1667   :  { %v1703_v30 = vmul.f32 %v1702_v59, %v1516_v38 }
0x16d5   :  { %v1706_v60 = vpop.permute.xlu0 %1705 }
0x16d6   :  { %v1708_v0 = vmul.f32 %v1706_v60, %v1702_v59 }
0x16d8   :  { %1710 = vrot.lane.b32.xlu1 %v1708_v0, %s1920_s9 }
0x174a   :  { %v1711_v1 = vpop.permute.xlu1 %1710 }
0x174b   :  { %v1713_v52 = vadd.f32 %v1711_v1, %v1703_v30 }
0x174d   :  { %1917 = vtanh.f32 %v1713_v52 }
0x175a   :  { %v1918_v56 = vpop.eup %1917 }
0x175b   :  { %1716 = vrot.lane.b32.xlu0 %v1918_v56, %s1919_s1 }
0x17cd   :  { %v1717_v58 = vpop.permute.xlu0 %1716 }
0x17ce   :  { %v1719_v61 = vmul.f32 %v1717_v58, %v1702_v59 }
0x17d0   :  { %1721 = vrot.lane.b32.xlu1 %v1719_v61, %s1920_s9 }
0x1842   :  { %v1722_v11 = vpop.permute.xlu1 %1721 }
0x1843   :  { %1828 = vmatmul.mubr.msk.f32.vlgmr.msra.gmra.mxu1 %vm239_vm2, %v1722_v11 }
0x1903   :  { %v1791_v46 = vpop.f32.mrf.mxu1 }
0x1905   :  { %v1792_v62 = vpop.f32.mrf.mxu1 }
0x1906   :  { %v1795_v63 = vadd.f32 %v2172_v29, %v1792_v62 }
0x1908   :  { %1796 = vst [vmem:[%s2434_s7 + $0x38] sm:$0xff] %v1795_v63 }

</bundles_post_ra>
